<compile_context>
chip_gen: v6e
topology: v6e:2x2x1
jax: 0.10.0
libtpu: 0.0.40
codegen_flags: <defaults>
</compile_context>

<pallas_src>
import math

import jax
import jax.numpy as jnp
import numpy as np
from jax.experimental import pallas as pl
from jax.experimental.pallas import tpu as pltpu

# ---------------- problem sizes (small, consistent with the module) ----------------
B, I, S, C, H_FF, N_HEADS = 2, 8, 16, 32, 64, 4
HEAD_DIM = C // N_HEADS
LN_EPS = 1e-5
NEG = -1e9

R = B * I              # query rows (batch folded into sublanes)
RK = B * S             # key/value rows

# column offsets inside the packed weight/bias slab  (width = W_ALL)
OFF_SAQ = 0                          # self-attn Q weights (pre-scaled by 1/sqrt(d))
OFF_SAK = C                          # self-attn K weights
OFF_SAVWO = 2 * C                    # self-attn composed (Wv_h @ Wo_h), lane-stacked per head
OFF_CAK = OFF_SAVWO + N_HEADS * C    # cross-attn K weights
OFF_CAVWO = OFF_CAK + C              # cross-attn composed (Wv_h @ Wo_h)
OFF_CAQ = OFF_CAVWO + N_HEADS * C    # cross-attn Q weights (pre-scaled)
OFF_FF1 = OFF_CAQ + C                # FFN first matrix
W_ALL = OFF_FF1 + H_FF               # = 448

# misc slab row offsets
ROW_W2 = 0                            # ffn_w2 occupies rows [0, H_FF)
ROW_LN1G, ROW_LN1B = H_FF + 0, H_FF + 1
ROW_LN2G, ROW_LN2B = H_FF + 2, H_FF + 3
ROW_LN3G, ROW_LN3B = H_FF + 4, H_FF + 5
ROW_FB2 = H_FF + 6
ROW_SAOB = H_FF + 7
ROW_CAOB = H_FF + 8
MISC_ROWS = H_FF + 16                 # padded to a multiple of 8 sublanes (rows 73..79 unused zeros)


# ---------------- the Pallas kernel: full EncoderLayer, whole batch, one invocation ----------------
def encoder_layer_kernel(act_ref, bias_ref, wb_ref, misc_ref, out_ref):
    f32 = jnp.float32
    act = act_ref[...]          # [2R+2RK, C]   rows: kq | x | kk | kv
    bias = bias_ref[...]        # [(1+H)*R, RK] rows: self bias | per-head cross biases
    wb = wb_ref[...]            # [C+1, W_ALL]  rows 0:C weights, row C biases
    misc = misc_ref[...]        # [MISC_ROWS, C]

    x = act[R:2 * R, :]         # residual stream [R, C]

    def brow(off, width):       # packed projection bias row slice
        return wb[C:C + 1, off:off + width]

    def mrow(r):                # single row of the misc slab
        return misc[r:r + 1, :]

    def softmax(s):
        e = jnp.exp(s - jnp.max(s, axis=-1, keepdims=True))
        # divide -> reciprocal (EUP slot); approx=False keeps the 1e-4 accuracy vs the reference
        return e * pl.reciprocal(jnp.sum(e, axis=-1, keepdims=True), approx=False)

    def layernorm(z, rg, rb):
        mu = jnp.mean(z, axis=-1, keepdims=True)
        zc = z - mu
        var = jnp.mean(zc * zc, axis=-1, keepdims=True)
        return zc * jax.lax.rsqrt(var + LN_EPS) * mrow(rg) + mrow(rb)

    # ---- ONE mega projection matmul for everything that depends only on raw inputs ----
    # rows: [kq | x | kk | kv], cols: [saQ*scale | saK | sa V@Wo | caK | ca V@Wo]
    P = jnp.dot(act, wb[0:C, 0:OFF_CAQ], preferred_element_type=f32)   # [2R+2RK, 352]

    q = P[0:R, OFF_SAQ:OFF_SAQ + C] + brow(OFF_SAQ, C)                 # already 1/sqrt(d)-scaled
    k = P[0:R, OFF_SAK:OFF_SAK + C] + brow(OFF_SAK, C)
    vwo_s = P[R:2 * R, OFF_SAVWO:OFF_SAVWO + N_HEADS * C] + brow(OFF_SAVWO, N_HEADS * C)
    kc = P[2 * R:2 * R + RK, OFF_CAK:OFF_CAK + C] + brow(OFF_CAK, C)
    vwo_c = P[2 * R + RK:2 * R + 2 * RK, OFF_CAVWO:OFF_CAVWO + N_HEADS * C] \
        + brow(OFF_CAVWO, N_HEADS * C)

    # ---- self-attention block (post-norm, dropout = identity) ----
    self_bias = bias[0:R, 0:R]          # block-diagonal -1e9 prevents cross-batch attention
    acc = jnp.zeros((R, C), f32)
    for h in range(N_HEADS):
        sl = slice(h * HEAD_DIM, (h + 1) * HEAD_DIM)
        s = jax.lax.dot_general(q[:, sl], k[:, sl], (((1,), (1,)), ((), ())),
                                preferred_element_type=f32) + self_bias
        p = softmax(s)
        # per-head V@Wo is pre-composed -> one [R,R] x [R,C] matmul per head, no O-proj concat
        acc = acc + jnp.dot(p, vwo_s[:, h * C:(h + 1) * C], preferred_element_type=f32)
    x1 = layernorm(x + acc + mrow(ROW_SAOB), ROW_LN1G, ROW_LN1B)

    # ---- soft-masked cross-attention block ----
    qc = jnp.dot(x1, wb[0:C, OFF_CAQ:OFF_CAQ + C], preferred_element_type=f32) + brow(OFF_CAQ, C)
    acc = jnp.zeros((R, C), f32)
    for h in range(N_HEADS):
        sl = slice(h * HEAD_DIM, (h + 1) * HEAD_DIM)
        s = jax.lax.dot_general(qc[:, sl], kc[:, sl], (((1,), (1,)), ((), ())),
                                preferred_element_type=f32) \
            + bias[(1 + h) * R:(2 + h) * R, :]        # sf[h]*soft_mask + key-pad + block-diag
        p = softmax(s)
        acc = acc + jnp.dot(p, vwo_c[:, h * C:(h + 1) * C], preferred_element_type=f32)
    x2 = layernorm(x1 + acc + mrow(ROW_CAOB), ROW_LN2G, ROW_LN2B)

    # ---- FFN block ----
    h1 = jnp.maximum(
        jnp.dot(x2, wb[0:C, OFF_FF1:OFF_FF1 + H_FF], preferred_element_type=f32)
        + brow(OFF_FF1, H_FF), 0.0)
    ff = jnp.dot(h1, misc[ROW_W2:ROW_W2 + H_FF, :], preferred_element_type=f32) + mrow(ROW_FB2)
    out_ref[...] = layernorm(x2 + ff, ROW_LN3G, ROW_LN3B)


# ---------------- one-time parameter packing (hoisted out of the per-call path) ----------------
def pack_params(p):
    scale = 1.0 / math.sqrt(HEAD_DIM)

    def vwo(wv, bv, wo):
        # Compose per-head (Wv_h @ Wo_h) and (bv_h @ Wo_h); lane-stack over heads.
        ws, bs = [], []
        for h in range(N_HEADS):
            sl = slice(h * HEAD_DIM, (h + 1) * HEAD_DIM)
            ws.append(wv[:, sl] @ wo[sl, :])      # [C, C]
            bs.append(bv[:, sl] @ wo[sl, :])      # [1, C]
        return jnp.concatenate(ws, axis=1), jnp.concatenate(bs, axis=1)

    sa_vwo_w, sa_vwo_b = vwo(p["sa_vw"], p["sa_vb"], p["sa_ow"])
    ca_vwo_w, ca_vwo_b = vwo(p["ca_vw"], p["ca_vb"], p["ca_ow"])

    w_all = jnp.concatenate(
        [p["sa_qw"] * scale, p["sa_kw"], sa_vwo_w,
         p["ca_kw"], ca_vwo_w, p["ca_qw"] * scale, p["ffn_w1"]], axis=1)      # [C, W_ALL]
    b_all = jnp.concatenate(
        [p["sa_qb"] * scale, p["sa_kb"], sa_vwo_b,
         p["ca_kb"], ca_vwo_b, p["ca_qb"] * scale, p["ffn_b1"]], axis=1)      # [1, W_ALL]
    wb = jnp.concatenate([w_all, b_all], axis=0)                              # [C+1, W_ALL]

    misc = jnp.concatenate(
        [p["ffn_w2"],
         p["ln1_g"], p["ln1_b"], p["ln2_g"], p["ln2_b"], p["ln3_g"], p["ln3_b"],
         p["ffn_b2"], p["sa_ob"], p["ca_ob"],
         jnp.zeros((MISC_ROWS - H_FF - 9, C), jnp.float32)], axis=0)          # [MISC_ROWS, C]

    return {"wb": wb, "misc": misc, "ca_sf": p["ca_sf"]}


# ---------------- jitted wrapper (per-call mask/activation assembly fuses with pallas_call) ----------------
@jax.jit
def encoder_layer(packed, query, kv, kv_mask, pos_key, pos_query, key_padding_mask):
    x0 = query.reshape(R, C)
    kv0 = kv.reshape(RK, C)
    act = jnp.concatenate(
        [x0 + pos_query.reshape(R, C), x0,
         kv0 + pos_key.reshape(RK, C), kv0], axis=0)                          # [2R+2RK, C]

    # block-diagonal additive masks (batch folded into sublanes)
    rowb = jnp.repeat(jnp.arange(B), I)                                       # [R]
    colb = jnp.repeat(jnp.arange(B), S)                                       # [RK]
    self_bias = jnp.where(rowb[:, None] == rowb[None, :], 0.0, NEG).astype(jnp.float32)
    self_bias = jnp.pad(self_bias, ((0, 0), (0, RK - R)))                     # [R, RK]; cols >= R unused
    kpm = jnp.where(key_padding_mask, NEG, 0.0).astype(jnp.float32).reshape(1, RK)
    cross_base = jnp.where(rowb[:, None] == colb[None, :], 0.0, NEG).astype(jnp.float32) + kpm
    mask_bd = jnp.einsum("bc,bis->bics", jnp.eye(B, dtype=jnp.float32),
                         kv_mask.astype(jnp.float32)).reshape(R, RK)
    # per-head cross bias with the learnable scale factor baked in: [H, R, RK] -> [H*R, RK]
    cross_h = cross_base[None] + packed["ca_sf"][:, None, None] * mask_bd[None]
    bias_slab = jnp.concatenate([self_bias, cross_h.reshape(N_HEADS * R, RK)], axis=0)

    out = pl.pallas_call(
        encoder_layer_kernel,
        out_shape=jax.ShapeDtypeStruct((R, C), jnp.float32),
        in_specs=[pl.BlockSpec(memory_space=pltpu.MemorySpace.VMEM)] * 4,     # whole arrays, no grid
        out_specs=pl.BlockSpec(memory_space=pltpu.MemorySpace.VMEM),
    )(act, bias_slab, packed["wb"], packed["misc"])
    return out.reshape(B, I, C)


# ---------------- pure-JAX reference (same math as the PyTorch module) ----------------
def ref_forward(p, query, kv, kv_mask, pos_key, pos_query, key_padding_mask):
    kpm_bias = jnp.where(key_padding_mask, NEG, 0.0).astype(jnp.float32)[:, None, :]

    def ln(x, g, b):
        mu = x.mean(-1, keepdims=True)
        xc = x - mu
        var = (xc * xc).mean(-1, keepdims=True)
        return xc / jnp.sqrt(var + LN_EPS) * g + b

    def mha(q, k, v, bias=None):
        Bq, Iq, _ = q.shape
        Sq = k.shape[1]
        qh = q.reshape(Bq, Iq, N_HEADS, HEAD_DIM)
        kh = k.reshape(Bq, Sq, N_HEADS, HEAD_DIM)
        vh = v.reshape(Bq, Sq, N_HEADS, HEAD_DIM)
        s = jnp.einsum("bihd,bshd->bhis", qh, kh) / math.sqrt(HEAD_DIM)
        if bias is not None:
            s = s + bias
        pr = jax.nn.softmax(s, axis=-1)
        o = jnp.einsum("bhis,bshd->bihd", pr, vh)
        return o.reshape(Bq, Iq, C)

    x = query
    kq = x + pos_query
    q = kq @ p["sa_qw"] + p["sa_qb"]
    k = kq @ p["sa_kw"] + p["sa_kb"]
    v = x @ p["sa_vw"] + p["sa_vb"]
    sa = mha(q, k, v) @ p["sa_ow"] + p["sa_ob"]
    x = ln(x + sa, p["ln1_g"], p["ln1_b"])

    qc = x @ p["ca_qw"] + p["ca_qb"]
    kc = (kv + pos_key) @ p["ca_kw"] + p["ca_kb"]
    vc = kv @ p["ca_vw"] + p["ca_vb"]
    bias = p["ca_sf"][None, :, None, None] * kv_mask[:, None, :, :] + kpm_bias[:, None, :, :]
    ca = mha(qc, kc, vc, bias) @ p["ca_ow"] + p["ca_ob"]
    x = ln(x + ca, p["ln2_g"], p["ln2_b"])

    h = jnp.maximum(x @ p["ffn_w1"] + p["ffn_b1"], 0.0)
    ff = h @ p["ffn_w2"] + p["ffn_b2"]
    return ln(x + ff, p["ln3_g"], p["ln3_b"])


# ---------------- deterministic parameter init ----------------
def init_params(key):
    ks = jax.random.split(key, 20)

    def w(k, shape):
        return 0.02 * jax.random.normal(k, shape, dtype=jnp.float32)

    return {
        "ln1_g": jnp.ones((1, C), jnp.float32), "ln1_b": jnp.zeros((1, C), jnp.float32),
        "sa_qw": w(ks[0], (C, C)), "sa_qb": w(ks[1], (1, C)),
        "sa_kw": w(ks[2], (C, C)), "sa_kb": w(ks[3], (1, C)),
        "sa_vw": w(ks[4], (C, C)), "sa_vb": w(ks[5], (1, C)),
        "sa_ow": w(ks[6], (C, C)), "sa_ob": w(ks[7], (1, C)),
        "ln2_g": jnp.ones((1, C), jnp.float32), "ln2_b": jnp.zeros((1, C), jnp.float32),
        "ca_qw": w(ks[8], (C, C)), "ca_qb": w(ks[9], (1, C)),
        "ca_kw": w(ks[10], (C, C)), "ca_kb": w(ks[11], (1, C)),
        "ca_vw": w(ks[12], (C, C)), "ca_vb": w(ks[13], (1, C)),
        "ca_ow": w(ks[14], (C, C)), "ca_ob": w(ks[15], (1, C)),
        "ca_sf": (1.0 + 0.1 * jnp.arange(N_HEADS, dtype=jnp.float32)),
        "ln3_g": jnp.ones((1, C), jnp.float32), "ln3_b": jnp.zeros((1, C), jnp.float32),
        "ffn_w1": w(ks[16], (C, H_FF)), "ffn_b1": w(ks[17], (1, H_FF)),
        "ffn_w2": w(ks[18], (H_FF, C)), "ffn_b2": w(ks[19], (1, C)),
    }


if __name__ == "__main__":
    root = jax.random.PRNGKey(0)
    kp, kq_, kkv, kmq, kmk, kmask = jax.random.split(root, 6)

    params = init_params(kp)
    packed = pack_params(params)                      # one-time packing, outside the hot path

    query = jax.random.normal(kq_, (B, I, C), dtype=jnp.float32)
    kv = jax.random.normal(kkv, (B, S, C), dtype=jnp.float32)
    pos_query = jax.random.normal(kmq, (B, I, C), dtype=jnp.float32)
    pos_key = jax.random.normal(kmk, (B, S, C), dtype=jnp.float32)
    kv_mask = jax.random.uniform(kmask, (B, I, S), dtype=jnp.float32)        # soft mask in [0, 1]
    key_padding_mask = jnp.broadcast_to(jnp.arange(S) >= (S - 3), (B, S))    # last 3 keys padded

    out = encoder_layer(packed, query, kv, kv_mask, pos_key, pos_query, key_padding_mask)
    out = jax.block_until_ready(out)

    ref = ref_forward(params, query, kv, kv_mask, pos_key, pos_query, key_padding_mask)
    ref = jax.block_until_ready(ref)

    np.testing.assert_allclose(np.asarray(out), np.asarray(ref), rtol=2e-4, atol=2e-4)
    print("KERNEL_OK")
</pallas_src>

<mosaic_0001>
module attributes {stable_mosaic.version = 11 : i64} {
  func.func @encoder_layer_kernel(%arg0: memref<96x32xf32, #tpu.memory_space<vmem>>, %arg1: memref<80x32xf32, #tpu.memory_space<vmem>>, %arg2: memref<33x448xf32, #tpu.memory_space<vmem>>, %arg3: memref<80x32xf32, #tpu.memory_space<vmem>>, %arg4: memref<16x32xf32, #tpu.memory_space<vmem>>) attributes {dimension_semantics = [], scalar_prefetch = 0 : i64, scratch_operands = 0 : i64, tpu.core_type = #tpu.core_type<tc>} {
    %c0 = arith.constant 0 : index
    %c0_0 = arith.constant 0 : index
    %0 = vector.load %arg0[%c0, %c0_0] : memref<96x32xf32, #tpu.memory_space<vmem>>, vector<96x32xf32>
    %c0_1 = arith.constant 0 : index
    %c0_2 = arith.constant 0 : index
    %1 = vector.load %arg1[%c0_1, %c0_2] : memref<80x32xf32, #tpu.memory_space<vmem>>, vector<80x32xf32>
    %c0_3 = arith.constant 0 : index
    %c0_4 = arith.constant 0 : index
    %2 = vector.load %arg2[%c0_3, %c0_4] : memref<33x448xf32, #tpu.memory_space<vmem>>, vector<33x448xf32>
    %c0_5 = arith.constant 0 : index
    %c0_6 = arith.constant 0 : index
    %3 = vector.load %arg3[%c0_5, %c0_6] : memref<80x32xf32, #tpu.memory_space<vmem>>, vector<80x32xf32>
    %4 = vector.extract_strided_slice %0 {offsets = [16, 0], sizes = [16, 32], strides = [1, 1]} : vector<96x32xf32> to vector<16x32xf32>
    %5 = vector.extract_strided_slice %2 {offsets = [0, 0], sizes = [32, 352], strides = [1, 1]} : vector<33x448xf32> to vector<32x352xf32>
    %cst = arith.constant dense<0.000000e+00> : vector<96x352xf32>
    %6 = tpu.matmul %0, %5, %cst {dimension_numbers = #tpu.dot_dimension_numbers<[1], [0], [0], [1], [0, 0, 1, 1], [], []>} : vector<96x32xf32>, vector<32x352xf32>, vector<96x352xf32> -> vector<96x352xf32>
    %7 = vector.extract_strided_slice %6 {offsets = [0, 0], sizes = [16, 32], strides = [1, 1]} : vector<96x352xf32> to vector<16x32xf32>
    %8 = vector.extract_strided_slice %2 {offsets = [32, 0], sizes = [1, 32], strides = [1, 1]} : vector<33x448xf32> to vector<1x32xf32>
    %9 = vector.broadcast %8 : vector<1x32xf32> to vector<16x32xf32>
    %10 = arith.addf %7, %9 : vector<16x32xf32>
    %11 = vector.extract_strided_slice %6 {offsets = [0, 32], sizes = [16, 32], strides = [1, 1]} : vector<96x352xf32> to vector<16x32xf32>
    %12 = vector.extract_strided_slice %2 {offsets = [32, 32], sizes = [1, 32], strides = [1, 1]} : vector<33x448xf32> to vector<1x32xf32>
    %13 = vector.broadcast %12 : vector<1x32xf32> to vector<16x32xf32>
    %14 = arith.addf %11, %13 : vector<16x32xf32>
    %15 = vector.extract_strided_slice %6 {offsets = [16, 64], sizes = [16, 128], strides = [1, 1]} : vector<96x352xf32> to vector<16x128xf32>
    %16 = vector.extract_strided_slice %2 {offsets = [32, 64], sizes = [1, 128], strides = [1, 1]} : vector<33x448xf32> to vector<1x128xf32>
    %17 = vector.broadcast %16 : vector<1x128xf32> to vector<16x128xf32>
    %18 = arith.addf %15, %17 : vector<16x128xf32>
    %19 = vector.extract_strided_slice %6 {offsets = [32, 192], sizes = [32, 32], strides = [1, 1]} : vector<96x352xf32> to vector<32x32xf32>
    %20 = vector.extract_strided_slice %2 {offsets = [32, 192], sizes = [1, 32], strides = [1, 1]} : vector<33x448xf32> to vector<1x32xf32>
    %21 = vector.broadcast %20 : vector<1x32xf32> to vector<32x32xf32>
    %22 = arith.addf %19, %21 : vector<32x32xf32>
    %23 = vector.extract_strided_slice %6 {offsets = [64, 224], sizes = [32, 128], strides = [1, 1]} : vector<96x352xf32> to vector<32x128xf32>
    %24 = vector.extract_strided_slice %2 {offsets = [32, 224], sizes = [1, 128], strides = [1, 1]} : vector<33x448xf32> to vector<1x128xf32>
    %25 = vector.broadcast %24 : vector<1x128xf32> to vector<32x128xf32>
    %26 = arith.addf %23, %25 : vector<32x128xf32>
    %27 = vector.extract_strided_slice %1 {offsets = [0, 0], sizes = [16, 16], strides = [1, 1]} : vector<80x32xf32> to vector<16x16xf32>
    %cst_7 = arith.constant 0.000000e+00 : f32
    %28 = vector.broadcast %cst_7 : f32 to vector<16x32xf32>
    %29 = vector.extract_strided_slice %10 {offsets = [0, 0], sizes = [16, 8], strides = [1, 1]} : vector<16x32xf32> to vector<16x8xf32>
    %30 = vector.extract_strided_slice %14 {offsets = [0, 0], sizes = [16, 8], strides = [1, 1]} : vector<16x32xf32> to vector<16x8xf32>
    %cst_8 = arith.constant dense<0.000000e+00> : vector<16x16xf32>
    %31 = tpu.matmul %29, %30, %cst_8 {dimension_numbers = #tpu.dot_dimension_numbers<[1], [1], [0], [0], [0, 0, 1, 0], [], []>} : vector<16x8xf32>, vector<16x8xf32>, vector<16x16xf32> -> vector<16x16xf32>
    %32 = arith.addf %31, %27 : vector<16x16xf32>
    %cst_9 = arith.constant dense<0xFF800000> : vector<16xf32>
    %33 = vector.multi_reduction <maximumf>, %32, %cst_9 [1] : vector<16x16xf32> to vector<16xf32>
    %34 = vector.shape_cast %33 : vector<16xf32> to vector<16x1xf32>
    %35 = vector.broadcast %34 : vector<16x1xf32> to vector<16x16xf32>
    %36 = arith.subf %32, %35 : vector<16x16xf32>
    %37 = math.exp %36 : vector<16x16xf32>
    %cst_10 = arith.constant dense<0.000000e+00> : vector<16xf32>
    %38 = vector.multi_reduction <add>, %37, %cst_10 [1] : vector<16x16xf32> to vector<16xf32>
    %39 = vector.shape_cast %38 : vector<16xf32> to vector<16x1xf32>
    %40 = tpu.reciprocal %39 : vector<16x1xf32> -> vector<16x1xf32>
    %41 = vector.broadcast %40 : vector<16x1xf32> to vector<16x16xf32>
    %42 = arith.mulf %37, %41 : vector<16x16xf32>
    %43 = vector.extract_strided_slice %18 {offsets = [0, 0], sizes = [16, 32], strides = [1, 1]} : vector<16x128xf32> to vector<16x32xf32>
    %cst_11 = arith.constant dense<0.000000e+00> : vector<16x32xf32>
    %44 = tpu.matmul %42, %43, %cst_11 {dimension_numbers = #tpu.dot_dimension_numbers<[1], [0], [0], [1], [0, 0, 1, 1], [], []>} : vector<16x16xf32>, vector<16x32xf32>, vector<16x32xf32> -> vector<16x32xf32>
    %45 = arith.addf %28, %44 : vector<16x32xf32>
    %46 = vector.extract_strided_slice %10 {offsets = [0, 8], sizes = [16, 8], strides = [1, 1]} : vector<16x32xf32> to vector<16x8xf32>
    %47 = vector.extract_strided_slice %14 {offsets = [0, 8], sizes = [16, 8], strides = [1, 1]} : vector<16x32xf32> to vector<16x8xf32>
    %cst_12 = arith.constant dense<0.000000e+00> : vector<16x16xf32>
    %48 = tpu.matmul %46, %47, %cst_12 {dimension_numbers = #tpu.dot_dimension_numbers<[1], [1], [0], [0], [0, 0, 1, 0], [], []>} : vector<16x8xf32>, vector<16x8xf32>, vector<16x16xf32> -> vector<16x16xf32>
    %49 = arith.addf %48, %27 : vector<16x16xf32>
    %cst_13 = arith.constant dense<0xFF800000> : vector<16xf32>
    %50 = vector.multi_reduction <maximumf>, %49, %cst_13 [1] : vector<16x16xf32> to vector<16xf32>
    %51 = vector.shape_cast %50 : vector<16xf32> to vector<16x1xf32>
    %52 = vector.broadcast %51 : vector<16x1xf32> to vector<16x16xf32>
    %53 = arith.subf %49, %52 : vector<16x16xf32>
    %54 = math.exp %53 : vector<16x16xf32>
    %cst_14 = arith.constant dense<0.000000e+00> : vector<16xf32>
    %55 = vector.multi_reduction <add>, %54, %cst_14 [1] : vector<16x16xf32> to vector<16xf32>
    %56 = vector.shape_cast %55 : vector<16xf32> to vector<16x1xf32>
    %57 = tpu.reciprocal %56 : vector<16x1xf32> -> vector<16x1xf32>
    %58 = vector.broadcast %57 : vector<16x1xf32> to vector<16x16xf32>
    %59 = arith.mulf %54, %58 : vector<16x16xf32>
    %60 = vector.extract_strided_slice %18 {offsets = [0, 32], sizes = [16, 32], strides = [1, 1]} : vector<16x128xf32> to vector<16x32xf32>
    %cst_15 = arith.constant dense<0.000000e+00> : vector<16x32xf32>
    %61 = tpu.matmul %59, %60, %cst_15 {dimension_numbers = #tpu.dot_dimension_numbers<[1], [0], [0], [1], [0, 0, 1, 1], [], []>} : vector<16x16xf32>, vector<16x32xf32>, vector<16x32xf32> -> vector<16x32xf32>
    %62 = arith.addf %45, %61 : vector<16x32xf32>
    %63 = vector.extract_strided_slice %10 {offsets = [0, 16], sizes = [16, 8], strides = [1, 1]} : vector<16x32xf32> to vector<16x8xf32>
    %64 = vector.extract_strided_slice %14 {offsets = [0, 16], sizes = [16, 8], strides = [1, 1]} : vector<16x32xf32> to vector<16x8xf32>
    %cst_16 = arith.constant dense<0.000000e+00> : vector<16x16xf32>
    %65 = tpu.matmul %63, %64, %cst_16 {dimension_numbers = #tpu.dot_dimension_numbers<[1], [1], [0], [0], [0, 0, 1, 0], [], []>} : vector<16x8xf32>, vector<16x8xf32>, vector<16x16xf32> -> vector<16x16xf32>
    %66 = arith.addf %65, %27 : vector<16x16xf32>
    %cst_17 = arith.constant dense<0xFF800000> : vector<16xf32>
    %67 = vector.multi_reduction <maximumf>, %66, %cst_17 [1] : vector<16x16xf32> to vector<16xf32>
    %68 = vector.shape_cast %67 : vector<16xf32> to vector<16x1xf32>
    %69 = vector.broadcast %68 : vector<16x1xf32> to vector<16x16xf32>
    %70 = arith.subf %66, %69 : vector<16x16xf32>
    %71 = math.exp %70 : vector<16x16xf32>
    %cst_18 = arith.constant dense<0.000000e+00> : vector<16xf32>
    %72 = vector.multi_reduction <add>, %71, %cst_18 [1] : vector<16x16xf32> to vector<16xf32>
    %73 = vector.shape_cast %72 : vector<16xf32> to vector<16x1xf32>
    %74 = tpu.reciprocal %73 : vector<16x1xf32> -> vector<16x1xf32>
    %75 = vector.broadcast %74 : vector<16x1xf32> to vector<16x16xf32>
    %76 = arith.mulf %71, %75 : vector<16x16xf32>
    %77 = vector.extract_strided_slice %18 {offsets = [0, 64], sizes = [16, 32], strides = [1, 1]} : vector<16x128xf32> to vector<16x32xf32>
    %cst_19 = arith.constant dense<0.000000e+00> : vector<16x32xf32>
    %78 = tpu.matmul %76, %77, %cst_19 {dimension_numbers = #tpu.dot_dimension_numbers<[1], [0], [0], [1], [0, 0, 1, 1], [], []>} : vector<16x16xf32>, vector<16x32xf32>, vector<16x32xf32> -> vector<16x32xf32>
    %79 = arith.addf %62, %78 : vector<16x32xf32>
    %80 = vector.extract_strided_slice %10 {offsets = [0, 24], sizes = [16, 8], strides = [1, 1]} : vector<16x32xf32> to vector<16x8xf32>
    %81 = vector.extract_strided_slice %14 {offsets = [0, 24], sizes = [16, 8], strides = [1, 1]} : vector<16x32xf32> to vector<16x8xf32>
    %cst_20 = arith.constant dense<0.000000e+00> : vector<16x16xf32>
    %82 = tpu.matmul %80, %81, %cst_20 {dimension_numbers = #tpu.dot_dimension_numbers<[1], [1], [0], [0], [0, 0, 1, 0], [], []>} : vector<16x8xf32>, vector<16x8xf32>, vector<16x16xf32> -> vector<16x16xf32>
    %83 = arith.addf %82, %27 : vector<16x16xf32>
    %cst_21 = arith.constant dense<0xFF800000> : vector<16xf32>
    %84 = vector.multi_reduction <maximumf>, %83, %cst_21 [1] : vector<16x16xf32> to vector<16xf32>
    %85 = vector.shape_cast %84 : vector<16xf32> to vector<16x1xf32>
    %86 = vector.broadcast %85 : vector<16x1xf32> to vector<16x16xf32>
    %87 = arith.subf %83, %86 : vector<16x16xf32>
    %88 = math.exp %87 : vector<16x16xf32>
    %cst_22 = arith.constant dense<0.000000e+00> : vector<16xf32>
    %89 = vector.multi_reduction <add>, %88, %cst_22 [1] : vector<16x16xf32> to vector<16xf32>
    %90 = vector.shape_cast %89 : vector<16xf32> to vector<16x1xf32>
    %91 = tpu.reciprocal %90 : vector<16x1xf32> -> vector<16x1xf32>
    %92 = vector.broadcast %91 : vector<16x1xf32> to vector<16x16xf32>
    %93 = arith.mulf %88, %92 : vector<16x16xf32>
    %94 = vector.extract_strided_slice %18 {offsets = [0, 96], sizes = [16, 32], strides = [1, 1]} : vector<16x128xf32> to vector<16x32xf32>
    %cst_23 = arith.constant dense<0.000000e+00> : vector<16x32xf32>
    %95 = tpu.matmul %93, %94, %cst_23 {dimension_numbers = #tpu.dot_dimension_numbers<[1], [0], [0], [1], [0, 0, 1, 1], [], []>} : vector<16x16xf32>, vector<16x32xf32>, vector<16x32xf32> -> vector<16x32xf32>
    %96 = arith.addf %79, %95 : vector<16x32xf32>
    %97 = arith.addf %4, %96 : vector<16x32xf32>
    %98 = vector.extract_strided_slice %3 {offsets = [71, 0], sizes = [1, 32], strides = [1, 1]} : vector<80x32xf32> to vector<1x32xf32>
    %99 = vector.broadcast %98 : vector<1x32xf32> to vector<16x32xf32>
    %100 = arith.addf %97, %99 : vector<16x32xf32>
    %cst_24 = arith.constant dense<0.000000e+00> : vector<16xf32>
    %101 = vector.multi_reduction <add>, %100, %cst_24 [1] : vector<16x32xf32> to vector<16xf32>
    %102 = vector.shape_cast %101 : vector<16xf32> to vector<16x1xf32>
    %cst_25 = arith.constant 3.200000e+01 : f32
    %103 = vector.broadcast %cst_25 : f32 to vector<16x1xf32>
    %104 = arith.divf %102, %103 : vector<16x1xf32>
    %105 = vector.broadcast %104 : vector<16x1xf32> to vector<16x32xf32>
    %106 = arith.subf %100, %105 : vector<16x32xf32>
    %107 = arith.mulf %106, %106 : vector<16x32xf32>
    %cst_26 = arith.constant dense<0.000000e+00> : vector<16xf32>
    %108 = vector.multi_reduction <add>, %107, %cst_26 [1] : vector<16x32xf32> to vector<16xf32>
    %109 = vector.shape_cast %108 : vector<16xf32> to vector<16x1xf32>
    %cst_27 = arith.constant 3.200000e+01 : f32
    %110 = vector.broadcast %cst_27 : f32 to vector<16x1xf32>
    %111 = arith.divf %109, %110 : vector<16x1xf32>
    %cst_28 = arith.constant 9.99999974E-6 : f32
    %112 = vector.broadcast %cst_28 : f32 to vector<16x1xf32>
    %113 = arith.addf %111, %112 : vector<16x1xf32>
    %114 = math.rsqrt %113 : vector<16x1xf32>
    %115 = vector.broadcast %114 : vector<16x1xf32> to vector<16x32xf32>
    %116 = arith.mulf %106, %115 : vector<16x32xf32>
    %117 = vector.extract_strided_slice %3 {offsets = [64, 0], sizes = [1, 32], strides = [1, 1]} : vector<80x32xf32> to vector<1x32xf32>
    %118 = vector.broadcast %117 : vector<1x32xf32> to vector<16x32xf32>
    %119 = arith.mulf %116, %118 : vector<16x32xf32>
    %120 = vector.extract_strided_slice %3 {offsets = [65, 0], sizes = [1, 32], strides = [1, 1]} : vector<80x32xf32> to vector<1x32xf32>
    %121 = vector.broadcast %120 : vector<1x32xf32> to vector<16x32xf32>
    %122 = arith.addf %119, %121 : vector<16x32xf32>
    %123 = vector.extract_strided_slice %2 {offsets = [0, 352], sizes = [32, 32], strides = [1, 1]} : vector<33x448xf32> to vector<32x32xf32>
    %cst_29 = arith.constant dense<0.000000e+00> : vector<16x32xf32>
    %124 = tpu.matmul %122, %123, %cst_29 {dimension_numbers = #tpu.dot_dimension_numbers<[1], [0], [0], [1], [0, 0, 1, 1], [], []>} : vector<16x32xf32>, vector<32x32xf32>, vector<16x32xf32> -> vector<16x32xf32>
    %125 = vector.extract_strided_slice %2 {offsets = [32, 352], sizes = [1, 32], strides = [1, 1]} : vector<33x448xf32> to vector<1x32xf32>
    %126 = vector.broadcast %125 : vector<1x32xf32> to vector<16x32xf32>
    %127 = arith.addf %124, %126 : vector<16x32xf32>
    %cst_30 = arith.constant 0.000000e+00 : f32
    %128 = vector.broadcast %cst_30 : f32 to vector<16x32xf32>
    %129 = vector.extract_strided_slice %127 {offsets = [0, 0], sizes = [16, 8], strides = [1, 1]} : vector<16x32xf32> to vector<16x8xf32>
    %130 = vector.extract_strided_slice %22 {offsets = [0, 0], sizes = [32, 8], strides = [1, 1]} : vector<32x32xf32> to vector<32x8xf32>
    %cst_31 = arith.constant dense<0.000000e+00> : vector<16x32xf32>
    %131 = tpu.matmul %129, %130, %cst_31 {dimension_numbers = #tpu.dot_dimension_numbers<[1], [1], [0], [0], [0, 0, 1, 0], [], []>} : vector<16x8xf32>, vector<32x8xf32>, vector<16x32xf32> -> vector<16x32xf32>
    %132 = vector.extract_strided_slice %1 {offsets = [16, 0], sizes = [16, 32], strides = [1, 1]} : vector<80x32xf32> to vector<16x32xf32>
    %133 = arith.addf %131, %132 : vector<16x32xf32>
    %cst_32 = arith.constant dense<0xFF800000> : vector<16xf32>
    %134 = vector.multi_reduction <maximumf>, %133, %cst_32 [1] : vector<16x32xf32> to vector<16xf32>
    %135 = vector.shape_cast %134 : vector<16xf32> to vector<16x1xf32>
    %136 = vector.broadcast %135 : vector<16x1xf32> to vector<16x32xf32>
    %137 = arith.subf %133, %136 : vector<16x32xf32>
    %138 = math.exp %137 : vector<16x32xf32>
    %cst_33 = arith.constant dense<0.000000e+00> : vector<16xf32>
    %139 = vector.multi_reduction <add>, %138, %cst_33 [1] : vector<16x32xf32> to vector<16xf32>
    %140 = vector.shape_cast %139 : vector<16xf32> to vector<16x1xf32>
    %141 = tpu.reciprocal %140 : vector<16x1xf32> -> vector<16x1xf32>
    %142 = vector.broadcast %141 : vector<16x1xf32> to vector<16x32xf32>
    %143 = arith.mulf %138, %142 : vector<16x32xf32>
    %144 = vector.extract_strided_slice %26 {offsets = [0, 0], sizes = [32, 32], strides = [1, 1]} : vector<32x128xf32> to vector<32x32xf32>
    %cst_34 = arith.constant dense<0.000000e+00> : vector<16x32xf32>
    %145 = tpu.matmul %143, %144, %cst_34 {dimension_numbers = #tpu.dot_dimension_numbers<[1], [0], [0], [1], [0, 0, 1, 1], [], []>} : vector<16x32xf32>, vector<32x32xf32>, vector<16x32xf32> -> vector<16x32xf32>
    %146 = arith.addf %128, %145 : vector<16x32xf32>
    %147 = vector.extract_strided_slice %127 {offsets = [0, 8], sizes = [16, 8], strides = [1, 1]} : vector<16x32xf32> to vector<16x8xf32>
    %148 = vector.extract_strided_slice %22 {offsets = [0, 8], sizes = [32, 8], strides = [1, 1]} : vector<32x32xf32> to vector<32x8xf32>
    %cst_35 = arith.constant dense<0.000000e+00> : vector<16x32xf32>
    %149 = tpu.matmul %147, %148, %cst_35 {dimension_numbers = #tpu.dot_dimension_numbers<[1], [1], [0], [0], [0, 0, 1, 0], [], []>} : vector<16x8xf32>, vector<32x8xf32>, vector<16x32xf32> -> vector<16x32xf32>
    %150 = vector.extract_strided_slice %1 {offsets = [32, 0], sizes = [16, 32], strides = [1, 1]} : vector<80x32xf32> to vector<16x32xf32>
    %151 = arith.addf %149, %150 : vector<16x32xf32>
    %cst_36 = arith.constant dense<0xFF800000> : vector<16xf32>
    %152 = vector.multi_reduction <maximumf>, %151, %cst_36 [1] : vector<16x32xf32> to vector<16xf32>
    %153 = vector.shape_cast %152 : vector<16xf32> to vector<16x1xf32>
    %154 = vector.broadcast %153 : vector<16x1xf32> to vector<16x32xf32>
    %155 = arith.subf %151, %154 : vector<16x32xf32>
    %156 = math.exp %155 : vector<16x32xf32>
    %cst_37 = arith.constant dense<0.000000e+00> : vector<16xf32>
    %157 = vector.multi_reduction <add>, %156, %cst_37 [1] : vector<16x32xf32> to vector<16xf32>
    %158 = vector.shape_cast %157 : vector<16xf32> to vector<16x1xf32>
    %159 = tpu.reciprocal %158 : vector<16x1xf32> -> vector<16x1xf32>
    %160 = vector.broadcast %159 : vector<16x1xf32> to vector<16x32xf32>
    %161 = arith.mulf %156, %160 : vector<16x32xf32>
    %162 = vector.extract_strided_slice %26 {offsets = [0, 32], sizes = [32, 32], strides = [1, 1]} : vector<32x128xf32> to vector<32x32xf32>
    %cst_38 = arith.constant dense<0.000000e+00> : vector<16x32xf32>
    %163 = tpu.matmul %161, %162, %cst_38 {dimension_numbers = #tpu.dot_dimension_numbers<[1], [0], [0], [1], [0, 0, 1, 1], [], []>} : vector<16x32xf32>, vector<32x32xf32>, vector<16x32xf32> -> vector<16x32xf32>
    %164 = arith.addf %146, %163 : vector<16x32xf32>
    %165 = vector.extract_strided_slice %127 {offsets = [0, 16], sizes = [16, 8], strides = [1, 1]} : vector<16x32xf32> to vector<16x8xf32>
    %166 = vector.extract_strided_slice %22 {offsets = [0, 16], sizes = [32, 8], strides = [1, 1]} : vector<32x32xf32> to vector<32x8xf32>
    %cst_39 = arith.constant dense<0.000000e+00> : vector<16x32xf32>
    %167 = tpu.matmul %165, %166, %cst_39 {dimension_numbers = #tpu.dot_dimension_numbers<[1], [1], [0], [0], [0, 0, 1, 0], [], []>} : vector<16x8xf32>, vector<32x8xf32>, vector<16x32xf32> -> vector<16x32xf32>
    %168 = vector.extract_strided_slice %1 {offsets = [48, 0], sizes = [16, 32], strides = [1, 1]} : vector<80x32xf32> to vector<16x32xf32>
    %169 = arith.addf %167, %168 : vector<16x32xf32>
    %cst_40 = arith.constant dense<0xFF800000> : vector<16xf32>
    %170 = vector.multi_reduction <maximumf>, %169, %cst_40 [1] : vector<16x32xf32> to vector<16xf32>
    %171 = vector.shape_cast %170 : vector<16xf32> to vector<16x1xf32>
    %172 = vector.broadcast %171 : vector<16x1xf32> to vector<16x32xf32>
    %173 = arith.subf %169, %172 : vector<16x32xf32>
    %174 = math.exp %173 : vector<16x32xf32>
    %cst_41 = arith.constant dense<0.000000e+00> : vector<16xf32>
    %175 = vector.multi_reduction <add>, %174, %cst_41 [1] : vector<16x32xf32> to vector<16xf32>
    %176 = vector.shape_cast %175 : vector<16xf32> to vector<16x1xf32>
    %177 = tpu.reciprocal %176 : vector<16x1xf32> -> vector<16x1xf32>
    %178 = vector.broadcast %177 : vector<16x1xf32> to vector<16x32xf32>
    %179 = arith.mulf %174, %178 : vector<16x32xf32>
    %180 = vector.extract_strided_slice %26 {offsets = [0, 64], sizes = [32, 32], strides = [1, 1]} : vector<32x128xf32> to vector<32x32xf32>
    %cst_42 = arith.constant dense<0.000000e+00> : vector<16x32xf32>
    %181 = tpu.matmul %179, %180, %cst_42 {dimension_numbers = #tpu.dot_dimension_numbers<[1], [0], [0], [1], [0, 0, 1, 1], [], []>} : vector<16x32xf32>, vector<32x32xf32>, vector<16x32xf32> -> vector<16x32xf32>
    %182 = arith.addf %164, %181 : vector<16x32xf32>
    %183 = vector.extract_strided_slice %127 {offsets = [0, 24], sizes = [16, 8], strides = [1, 1]} : vector<16x32xf32> to vector<16x8xf32>
    %184 = vector.extract_strided_slice %22 {offsets = [0, 24], sizes = [32, 8], strides = [1, 1]} : vector<32x32xf32> to vector<32x8xf32>
    %cst_43 = arith.constant dense<0.000000e+00> : vector<16x32xf32>
    %185 = tpu.matmul %183, %184, %cst_43 {dimension_numbers = #tpu.dot_dimension_numbers<[1], [1], [0], [0], [0, 0, 1, 0], [], []>} : vector<16x8xf32>, vector<32x8xf32>, vector<16x32xf32> -> vector<16x32xf32>
    %186 = vector.extract_strided_slice %1 {offsets = [64, 0], sizes = [16, 32], strides = [1, 1]} : vector<80x32xf32> to vector<16x32xf32>
    %187 = arith.addf %185, %186 : vector<16x32xf32>
    %cst_44 = arith.constant dense<0xFF800000> : vector<16xf32>
    %188 = vector.multi_reduction <maximumf>, %187, %cst_44 [1] : vector<16x32xf32> to vector<16xf32>
    %189 = vector.shape_cast %188 : vector<16xf32> to vector<16x1xf32>
    %190 = vector.broadcast %189 : vector<16x1xf32> to vector<16x32xf32>
    %191 = arith.subf %187, %190 : vector<16x32xf32>
    %192 = math.exp %191 : vector<16x32xf32>
    %cst_45 = arith.constant dense<0.000000e+00> : vector<16xf32>
    %193 = vector.multi_reduction <add>, %192, %cst_45 [1] : vector<16x32xf32> to vector<16xf32>
    %194 = vector.shape_cast %193 : vector<16xf32> to vector<16x1xf32>
    %195 = tpu.reciprocal %194 : vector<16x1xf32> -> vector<16x1xf32>
    %196 = vector.broadcast %195 : vector<16x1xf32> to vector<16x32xf32>
    %197 = arith.mulf %192, %196 : vector<16x32xf32>
    %198 = vector.extract_strided_slice %26 {offsets = [0, 96], sizes = [32, 32], strides = [1, 1]} : vector<32x128xf32> to vector<32x32xf32>
    %cst_46 = arith.constant dense<0.000000e+00> : vector<16x32xf32>
    %199 = tpu.matmul %197, %198, %cst_46 {dimension_numbers = #tpu.dot_dimension_numbers<[1], [0], [0], [1], [0, 0, 1, 1], [], []>} : vector<16x32xf32>, vector<32x32xf32>, vector<16x32xf32> -> vector<16x32xf32>
    %200 = arith.addf %182, %199 : vector<16x32xf32>
    %201 = arith.addf %122, %200 : vector<16x32xf32>
    %202 = vector.extract_strided_slice %3 {offsets = [72, 0], sizes = [1, 32], strides = [1, 1]} : vector<80x32xf32> to vector<1x32xf32>
    %203 = vector.broadcast %202 : vector<1x32xf32> to vector<16x32xf32>
    %204 = arith.addf %201, %203 : vector<16x32xf32>
    %cst_47 = arith.constant dense<0.000000e+00> : vector<16xf32>
    %205 = vector.multi_reduction <add>, %204, %cst_47 [1] : vector<16x32xf32> to vector<16xf32>
    %206 = vector.shape_cast %205 : vector<16xf32> to vector<16x1xf32>
    %cst_48 = arith.constant 3.200000e+01 : f32
    %207 = vector.broadcast %cst_48 : f32 to vector<16x1xf32>
    %208 = arith.divf %206, %207 : vector<16x1xf32>
    %209 = vector.broadcast %208 : vector<16x1xf32> to vector<16x32xf32>
    %210 = arith.subf %204, %209 : vector<16x32xf32>
    %211 = arith.mulf %210, %210 : vector<16x32xf32>
    %cst_49 = arith.constant dense<0.000000e+00> : vector<16xf32>
    %212 = vector.multi_reduction <add>, %211, %cst_49 [1] : vector<16x32xf32> to vector<16xf32>
    %213 = vector.shape_cast %212 : vector<16xf32> to vector<16x1xf32>
    %cst_50 = arith.constant 3.200000e+01 : f32
    %214 = vector.broadcast %cst_50 : f32 to vector<16x1xf32>
    %215 = arith.divf %213, %214 : vector<16x1xf32>
    %cst_51 = arith.constant 9.99999974E-6 : f32
    %216 = vector.broadcast %cst_51 : f32 to vector<16x1xf32>
    %217 = arith.addf %215, %216 : vector<16x1xf32>
    %218 = math.rsqrt %217 : vector<16x1xf32>
    %219 = vector.broadcast %218 : vector<16x1xf32> to vector<16x32xf32>
    %220 = arith.mulf %210, %219 : vector<16x32xf32>
    %221 = vector.extract_strided_slice %3 {offsets = [66, 0], sizes = [1, 32], strides = [1, 1]} : vector<80x32xf32> to vector<1x32xf32>
    %222 = vector.broadcast %221 : vector<1x32xf32> to vector<16x32xf32>
    %223 = arith.mulf %220, %222 : vector<16x32xf32>
    %224 = vector.extract_strided_slice %3 {offsets = [67, 0], sizes = [1, 32], strides = [1, 1]} : vector<80x32xf32> to vector<1x32xf32>
    %225 = vector.broadcast %224 : vector<1x32xf32> to vector<16x32xf32>
    %226 = arith.addf %223, %225 : vector<16x32xf32>
    %227 = vector.extract_strided_slice %2 {offsets = [0, 384], sizes = [32, 64], strides = [1, 1]} : vector<33x448xf32> to vector<32x64xf32>
    %cst_52 = arith.constant dense<0.000000e+00> : vector<16x64xf32>
    %228 = tpu.matmul %226, %227, %cst_52 {dimension_numbers = #tpu.dot_dimension_numbers<[1], [0], [0], [1], [0, 0, 1, 1], [], []>} : vector<16x32xf32>, vector<32x64xf32>, vector<16x64xf32> -> vector<16x64xf32>
    %229 = vector.extract_strided_slice %2 {offsets = [32, 384], sizes = [1, 64], strides = [1, 1]} : vector<33x448xf32> to vector<1x64xf32>
    %230 = vector.broadcast %229 : vector<1x64xf32> to vector<16x64xf32>
    %231 = arith.addf %228, %230 : vector<16x64xf32>
    %cst_53 = arith.constant 0.000000e+00 : f32
    %232 = vector.broadcast %cst_53 : f32 to vector<16x64xf32>
    %233 = arith.maximumf %231, %232 : vector<16x64xf32>
    %234 = vector.extract_strided_slice %3 {offsets = [0, 0], sizes = [64, 32], strides = [1, 1]} : vector<80x32xf32> to vector<64x32xf32>
    %cst_54 = arith.constant dense<0.000000e+00> : vector<16x32xf32>
    %235 = tpu.matmul %233, %234, %cst_54 {dimension_numbers = #tpu.dot_dimension_numbers<[1], [0], [0], [1], [0, 0, 1, 1], [], []>} : vector<16x64xf32>, vector<64x32xf32>, vector<16x32xf32> -> vector<16x32xf32>
    %236 = vector.extract_strided_slice %3 {offsets = [70, 0], sizes = [1, 32], strides = [1, 1]} : vector<80x32xf32> to vector<1x32xf32>
    %237 = vector.broadcast %236 : vector<1x32xf32> to vector<16x32xf32>
    %238 = arith.addf %235, %237 : vector<16x32xf32>
    %239 = arith.addf %226, %238 : vector<16x32xf32>
    %cst_55 = arith.constant dense<0.000000e+00> : vector<16xf32>
    %240 = vector.multi_reduction <add>, %239, %cst_55 [1] : vector<16x32xf32> to vector<16xf32>
    %241 = vector.shape_cast %240 : vector<16xf32> to vector<16x1xf32>
    %cst_56 = arith.constant 3.200000e+01 : f32
    %242 = vector.broadcast %cst_56 : f32 to vector<16x1xf32>
    %243 = arith.divf %241, %242 : vector<16x1xf32>
    %244 = vector.broadcast %243 : vector<16x1xf32> to vector<16x32xf32>
    %245 = arith.subf %239, %244 : vector<16x32xf32>
    %246 = arith.mulf %245, %245 : vector<16x32xf32>
    %cst_57 = arith.constant dense<0.000000e+00> : vector<16xf32>
    %247 = vector.multi_reduction <add>, %246, %cst_57 [1] : vector<16x32xf32> to vector<16xf32>
    %248 = vector.shape_cast %247 : vector<16xf32> to vector<16x1xf32>
    %cst_58 = arith.constant 3.200000e+01 : f32
    %249 = vector.broadcast %cst_58 : f32 to vector<16x1xf32>
    %250 = arith.divf %248, %249 : vector<16x1xf32>
    %cst_59 = arith.constant 9.99999974E-6 : f32
    %251 = vector.broadcast %cst_59 : f32 to vector<16x1xf32>
    %252 = arith.addf %250, %251 : vector<16x1xf32>
    %253 = math.rsqrt %252 : vector<16x1xf32>
    %254 = vector.broadcast %253 : vector<16x1xf32> to vector<16x32xf32>
    %255 = arith.mulf %245, %254 : vector<16x32xf32>
    %256 = vector.extract_strided_slice %3 {offsets = [68, 0], sizes = [1, 32], strides = [1, 1]} : vector<80x32xf32> to vector<1x32xf32>
    %257 = vector.broadcast %256 : vector<1x32xf32> to vector<16x32xf32>
    %258 = arith.mulf %255, %257 : vector<16x32xf32>
    %259 = vector.extract_strided_slice %3 {offsets = [69, 0], sizes = [1, 32], strides = [1, 1]} : vector<80x32xf32> to vector<1x32xf32>
    %260 = vector.broadcast %259 : vector<1x32xf32> to vector<16x32xf32>
    %261 = arith.addf %258, %260 : vector<16x32xf32>
    %c0_60 = arith.constant 0 : index
    %c0_61 = arith.constant 0 : index
    %262 = vector.load %arg4[%c0_60, %c0_61] : memref<16x32xf32, #tpu.memory_space<vmem>>, vector<16x32xf32>
    tpu.vector_store %arg4[%c0_60, %c0_61], %261 {strides = array<i32>} : memref<16x32xf32, #tpu.memory_space<vmem>>, vector<16x32xf32>,
    return
  }
}

</mosaic_0001>

<bundles_post_ra>
// kernel: eq.16
= control target key start
LH: loop header
LB: loop body
LE: loop exit
PB: predicated region body
PF: predicated region fallthrough
CT: control target
= control target key end

     0   :  { %vm8_vm0 = vcmask 64512   ;;  %vm14_vm1 = vcmask 130112   ;;  %s42_s0 = inlined_call_operand.vmem [shape: s32[2,8], index: 0, kind: input, shape index: {}]   ;;  %s43_s1 = inlined_call_operand.vmem [shape: s32[16], index: 1, kind: output, shape index: {}]  }
   0x1   :  { %v5_v0 = vld [vmem:[%s42_s0] sm:$0x3]  ;;  %s25_s0 = smov 8  }
   0x2   :  { %6 = vst [vmem:[#allocation1] sm:$0x3] %v5_v0 }
   0x9   :  { %v11_v1 = vld [vmem:[#allocation1 + $0x1] sm:$0x1]   ;;  %v7_v2 = vld [vmem:[#allocation1] sm:$0x1]  }
   0xa   :  { %12 = vrot.lane.b32.xlu0 %v11_v1, %s25_s0  ;;  %9 = vst.msk [vmem:[#allocation0] sm:$0x1] %vm8_vm0, %v7_v2  }
  0x7c   :  { %v13_v3 = vpop.permute.xlu0 %12  }
  0x7d   :  { %15 = vst.msk [vmem:[#allocation0] sm:$0x1] %vm14_vm1, %v13_v3  }
  0x84   :  { %v20_v4 = vld [vmem:[#allocation0] sm:$0x1] }
  0x85   :  { %23 = vst [vmem:[%s43_s1] sm:$0x1] %v20_v4 }

// kernel: mul.11
= control target key start
LH: loop header
LB: loop body
LE: loop exit
PB: predicated region body
PF: predicated region fallthrough
CT: control target
= control target key end

     0   :  { %vm83_vm0 = vcmask 1047556   ;;  %vm85_vm1 = vcmask 130048   ;;  %vm104_vm2 = vcmask 261248   ;;  %s226_s0 = inlined_call_operand.vmem [shape: f32[2,8,2,16], index: 0, kind: input, shape index: {}]   ;;  %s227_s1 = inlined_call_operand.vmem [shape: f32[16,32], index: 1, kind: output, shape index: {}]  }
   0x1   :  { %v139_v0 = vld [vmem:[%s226_s0 + $0xe] sm:$0x3]  ;;  %v140_v1 = vld [vmem:[%s226_s0 + $0xc] sm:$0x3]  ;;  %v141_v2 = vld [vmem:[%s226_s0 + $0xa] sm:$0x3] }
   0x2   :  { %49 = vst [vmem:[#allocation0 + $0x38] sm:$0x3] %v139_v0  ;;  %54 = vst [vmem:[#allocation0 + $0x30] sm:$0x3] %v140_v1  ;;  %v142_v3 = vld [vmem:[%s226_s0 + $0x8] sm:$0x3] }
   0x3   :  { %59 = vst [vmem:[#allocation0 + $0x28] sm:$0x3] %v141_v2  ;;  %v143_v4 = vld [vmem:[%s226_s0 + $0x6] sm:$0x3]  ;;  %v144_v5 = vld [vmem:[%s226_s0 + $0x4] sm:$0x3] }
   0x4   :  { %64 = vst [vmem:[#allocation0 + $0x20] sm:$0x3] %v142_v3  ;;  %69 = vst [vmem:[#allocation0 + $0x18] sm:$0x3] %v143_v4  ;;  %v145_v6 = vld [vmem:[%s226_s0 + $0x2] sm:$0x3] }
   0x5   :  { %74 = vst [vmem:[#allocation0 + $0x10] sm:$0x3] %v144_v5  ;;  %v79_v7 = vld [vmem:[%s226_s0] sm:$0x3]  ;;  %78 = vst [vmem:[#allocation0 + $0x8] sm:$0x3] %v145_v6 }
   0x6   :  { %80 = vst [vmem:[#allocation0] sm:$0x3] %v79_v7  ;;  %v131_v8 = vld [vmem:[%s226_s0 + $0x1e] sm:$0x3]  ;;  %v132_v9 = vld [vmem:[%s226_s0 + $0x1c] sm:$0x3] }
   0x7   :  { %v133_v10 = vld [vmem:[%s226_s0 + $0x1a] sm:$0x3]  ;;  %9 = vst [vmem:[#allocation0 + $0x78] sm:$0x3] %v131_v8  ;;  %14 = vst [vmem:[#allocation0 + $0x70] sm:$0x3] %v132_v9 }
   0x8   :  { %19 = vst [vmem:[#allocation0 + $0x68] sm:$0x3] %v133_v10  ;;  %v134_v11 = vld [vmem:[%s226_s0 + $0x18] sm:$0x3]  ;;  %v135_v12 = vld [vmem:[%s226_s0 + $0x16] sm:$0x3] }
   0x9   :  { %v136_v13 = vld [vmem:[%s226_s0 + $0x14] sm:$0x3]  ;;  %24 = vst [vmem:[#allocation0 + $0x60] sm:$0x3] %v134_v11  ;;  %29 = vst [vmem:[#allocation0 + $0x58] sm:$0x3] %v135_v12 }
   0xa   :  { %34 = vst [vmem:[#allocation0 + $0x50] sm:$0x3] %v136_v13  ;;  %v137_v14 = vld [vmem:[%s226_s0 + $0x12] sm:$0x3]  ;;  %v138_v15 = vld [vmem:[%s226_s0 + $0x10] sm:$0x3] }
   0xb   :  { %39 = vst [vmem:[#allocation0 + $0x48] sm:$0x3] %v137_v14  ;;  %44 = vst [vmem:[#allocation0 + $0x40] sm:$0x3] %v138_v15  ;;  %s149_s0 = smov 16  }
   0xc   :  { %v99_v16 = vld [vmem:[#allocation0 + $0x1] ss:$8 sm:$0xf0]   ;;  %v82_v17 = vld [vmem:[#allocation0] ss:$8 sm:$0xf0]  }
   0xd   :  { %v97_v18 = vld [vmem:[#allocation0 + $0x1] ss:$8 sm:$0xf]   ;;  %v81_v19 = vld [vmem:[#allocation0] ss:$8 sm:$0xf]  }
   0xe   :  { %v101_v20 = vsel %vm83_vm0, %v99_v16, %v97_v18  ;;  %v84_v21 = vsel %vm83_vm0, %v82_v17, %v81_v19 }
   0xf   :  { %102 = vrot.lane.b32.xlu0 %v101_v20, %s149_s0  ;;  %86 = vst.msk [vmem:[%s227_s1] sm:$0xff] %vm85_vm1, %v84_v21  }
  0x10   :  { %v109_v22 = vld [vmem:[#allocation0 + $0x41] ss:$8 sm:$0xf0]   ;;  %v90_v23 = vld [vmem:[#allocation0 + $0x40] ss:$8 sm:$0xf0]  }
  0x12   :  { %v107_v24 = vld [vmem:[#allocation0 + $0x41] ss:$8 sm:$0xf]   ;;  %v88_v25 = vld [vmem:[#allocation0 + $0x40] ss:$8 sm:$0xf]  }
  0x13   :  { %v111_v26 = vsel %vm83_vm0, %v109_v22, %v107_v24  ;;  %v92_v27 = vsel %vm83_vm0, %v90_v23, %v88_v25 }
  0x14   :  { %146 = vst.msk [vmem:[%s227_s1 + $0x8] sm:$0xff] %vm85_vm1, %v92_v27   ;;  %112 = vrot.lane.b32.xlu0 %v111_v26, %s149_s0 }
  0x81   :  { %v103_v28 = vpop.permute.xlu0 %102  }
  0x82   :  { %105 = vst.msk [vmem:[%s227_s1] sm:$0xff] %vm104_vm2, %v103_v28  }
  0x86   :  { %v113_v29 = vpop.permute.xlu0 %112  }
  0x87   :  { %147 = vst.msk [vmem:[%s227_s1 + $0x8] sm:$0xff] %vm104_vm2, %v113_v29  }

// kernel: encoder_layer.1
= control target key start
LH: loop header
LB: loop body
LE: loop exit
PB: predicated region body
PF: predicated region fallthrough
CT: control target
= control target key end

     0   :  { %v3007_v4 = vmov 0.0   ;;  %vm70_vm0 = vcmask 261120   ;;  %s3655_s0 = inlined_call_operand.vmem [shape: f32[96,32], index: 0, kind: input, shape index: {}]   ;;  %s3656_s1 = inlined_call_operand.vmem [shape: f32[80,32], index: 1, kind: input, shape index: {}]   ;;  %s3657_s2 = inlined_call_operand.vmem [shape: f32[33,448], index: 2, kind: input, shape index: {}]   ;;  %s3658_s3 = inlined_call_operand.vmem [shape: f32[80,32], index: 3, kind: input, shape index: {}]   ;;  %s3659_s4 = inlined_call_operand.hbm [shape: f32[16,32], index: 4, kind: output, shape index: {}]  }
   0x1   :  { %v53_v0 = vld [vmem:[%s3657_s2 + $0x68] sm:$0xff]  ;;  %v52_v1 = vld [vmem:[%s3657_s2 + $0x60] sm:$0xff]  ;;  %171 = vmatprep.mubr.f32.mxu0 %v3007_v4  ;;  %v28_v10 = vld [vmem:[%s3655_s0 + $0x50] sm:$0xff] }
   0x2   :  { %v49_v2 = vld [vmem:[%s3657_s2 + $0x48] sm:$0xff]  ;;  %131 = vmatprep.subr.mxu0 %v53_v0  ;;  %v48_v3 = vld [vmem:[%s3657_s2 + $0x40] sm:$0xff]  ;;  %2885 = vmatprep.subr.mxu1 %v53_v0  ;;  %v3082_v11 = vld [vmem:[%s3657_s2 + $0x70] sm:$0xff] }
   0x3   :  { %132 = vmatpush1.msra.mxu0 %v52_v1  ;;  %v45_v5 = vld [vmem:[%s3657_s2 + $0x28] sm:$0xff]  ;;  %v44_v6 = vld [vmem:[%s3657_s2 + $0x20] sm:$0xff]  ;;  %2889 = vmatpush1.msra.mxu1 %v52_v1 }
   0x4   :  { %133 = vmatprep.subr.mxu0 %v49_v2  ;;  %v41_v7 = vld [vmem:[%s3657_s2 + $0x8] sm:$0xff]  ;;  %2886 = vmatprep.subr.mxu1 %v49_v2  ;;  %v40_v8 = vld [vmem:[%s3657_s2] sm:$0xff] }
   0x5   :  { %134 = vmatpush1.msra.mxu0 %v48_v3  ;;  %2890 = vmatpush1.msra.mxu1 %v48_v3  ;;  %v18_v9 = vld [vmem:[%s3655_s0] sm:$0xff] }
   0x6   :  { %135 = vmatprep.subr.mxu0 %v45_v5  ;;  %2887 = vmatprep.subr.mxu1 %v45_v5 }
   0x7   :  { %136 = vmatpush1.msra.mxu0 %v44_v6  ;;  %2891 = vmatpush1.msra.mxu1 %v44_v6 }
   0x8   :  { %137 = vmatprep.subr.mxu0 %v41_v7  ;;  %2888 = vmatprep.subr.mxu1 %v41_v7 }
   0x9   :  { %138 = vmatpush1.msra.mxu0 %v40_v8 }
   0xa   :  { %9 = vsyncpa [#allocation3], 0  ;;  %2466 = vmatmul.mubr.msk.f32.vlgmr.msra.gmra.mxu0 %vm70_vm0, %v18_v9  ;;  %2892 = vmatpush1.msra.mxu1 %v40_v8  ;;  %v19_v12 = vld [vmem:[%s3655_s0 + $0x8] sm:$0xff]  ;;  %v3093_v13 = vld [vmem:[%s3657_s2 + $0x50] sm:$0xff]  ;;  %vm387_vm1 = vcmask 64512   ;;  %s3008_s12 = smov 88  }
   0xb   :  { %176 = vmatprep.mubr.f32.mxu0 %v3007_v4  ;;  %223 = vmatprep.mubr.f32.mxu1 %v3007_v4  ;;  %v29_v14 = vld [vmem:[%s3655_s0 + $0x58] sm:$0xff]  ;;  %v3105_v15 = vld [vmem:[%s3657_s2 + $0x30] sm:$0xff]  ;;  %v22_v19 = vld [vmem:[%s3655_s0 + $0x20] sm:$0xff]  ;;  %s3009_s13 = smov 96   ;;  %s3010_s14 = smov 120   ;;  %vm471_vm2 = vcmask 130048  }
   0xc   :  { %2476 = vmatmul.mubr.msk.f32.vlgmr.msra.gmra.mxu1 %vm70_vm0, %v28_v10  ;;  %2674 = vmatprep.subr.mxu1 %v3082_v11  ;;  %v3113_v16 = vld [vmem:[%s3657_s2 + $0x10] sm:$0xff]  ;;  %v3136_v18 = vld [vmem:[%s3655_s0 + $0x18] sm:$0xff]  ;;  %v23_v20 = vld [vmem:[%s3655_s0 + $0x28] sm:$0xff]  ;;  %s3011_s15 = smov 80   ;;  %s3012_s16 = smov 112   ;;  %vm2326_vm3 = vcmask 523264  }
   0xd   :  { %2675 = vmatpush3.msra.mxu1 %v3082_v11  ;;  %228 = vmatprep.mubr.f32.mxu1 %v3007_v4  ;;  %v3123_v17 = vld [vmem:[%s3655_s0 + $0x10] sm:$0xff]  ;;  %v25_v22 = vld [vmem:[%s3655_s0 + $0x38] sm:$0xff]  ;;  %v26_v23 = vld [vmem:[%s3655_s0 + $0x40] sm:$0xff]  ;;  %s3013_s21 = smov 32   ;;  %s3014_s22 = smov 64  }
   0xe   :  { %2467 = vmatmul.mubr.msk.f32.gmra.mxu0 %vm70_vm0, %v19_v12  ;;  %2676 = vmatprep.subr.mxu1 %v3093_v13  ;;  %v24_v21 = vld [vmem:[%s3655_s0 + $0x30] sm:$0xff]  ;;  %v27_v24 = vld [vmem:[%s3655_s0 + $0x48] sm:$0xff]  ;;  %v2490_v25 = vld [vmem:[%s3657_s2 + $0x80] ss:$0 sm:$0xff]  ;;  %s3015_s23 = smov 72   ;;  %s3016_s24 = smov 104  }
   0xf   :  { %2677 = vmatpush3.msra.mxu1 %v3093_v13  ;;  %181 = vmatprep.mubr.f32.mxu0 %v3007_v4  ;;  %s3017_s29 = smov 56   ;;  %s3018_s10 = smov 48  }
  0x10   :  { %2477 = vmatmul.mubr.msk.f32.gmra.mxu1 %vm70_vm0, %v29_v14  ;;  %2678 = vmatprep.subr.mxu1 %v3105_v15  ;;  %s3019_s19 = smov 40  }
  0x11   :  { %2679 = vmatpush3.msra.mxu1 %v3105_v15  ;;  %2682 = vmatprep.mubr.msk.f32.mxu1 %vm70_vm0, %v18_v9 }
  0x12   :  { %2680 = vmatprep.subr.mxu1 %v3113_v16  ;;  %2468 = vmatmul.mubr.msk.f32.gmra.mxu0 %vm70_vm0, %v3123_v17 }
  0x13   :  { %2681 = vmatpush3.msra.mxu1 %v3113_v16  ;;  %187 = vmatprep.mubr.f32.mxu0 %v3007_v4 }
  0x14   :  { %2683 = vmatmul.mubr.msk.f32.vlgmr.msra.gmra.mxu1 %vm70_vm0, %v19_v12 }
  0x15   :  { %2685 = vmatprep.mubr.msk.f32.mxu1 %vm70_vm0, %v3123_v17 }
  0x16   :  { %2469 = vmatmul.mubr.msk.f32.gmra.mxu0 %vm70_vm0, %v3136_v18 }
  0x17   :  { %193 = vmatprep.mubr.f32.mxu0 %v3007_v4 }
  0x18   :  { %2686 = vmatmul.mubr.msk.f32.gmra.mxu1 %vm70_vm0, %v3136_v18 }
  0x19   :  { %2688 = vmatprep.mubr.msk.f32.mxu1 %vm70_vm0, %v22_v19 }
  0x1a   :  { %2470 = vmatmul.mubr.msk.f32.gmra.mxu0 %vm70_vm0, %v22_v19  ;;  %v3256_v19 = vld [vmem:[%s3656_s1 + $0x8] sm:$0xff] }
  0x1b   :  { %198 = vmatprep.mubr.f32.mxu0 %v3007_v4 }
  0x1c   :  { %2689 = vmatmul.mubr.msk.f32.gmra.mxu1 %vm70_vm0, %v23_v20 }
  0x1d   :  { %2691 = vmatprep.mubr.msk.f32.mxu1 %vm70_vm0, %v24_v21 }
  0x1e   :  { %2471 = vmatmul.mubr.msk.f32.gmra.mxu0 %vm70_vm0, %v23_v20 }
  0x1f   :  { %203 = vmatprep.mubr.f32.mxu0 %v3007_v4 }
  0x20   :  { %2692 = vmatmul.mubr.msk.f32.gmra.mxu1 %vm70_vm0, %v25_v22 }
  0x21   :  { %2694 = vmatprep.mubr.msk.f32.mxu1 %vm70_vm0, %v26_v23 }
  0x22   :  { %2472 = vmatmul.mubr.msk.f32.gmra.mxu0 %vm70_vm0, %v24_v21 }
  0x23   :  { %208 = vmatprep.mubr.f32.mxu0 %v3007_v4 }
  0x24   :  { %2695 = vmatmul.mubr.msk.f32.gmra.mxu1 %vm70_vm0, %v27_v24 }
  0x25   :  { %2697 = vmatprep.mubr.msk.f32.mxu1 %vm70_vm0, %v28_v10 }
  0x26   :  { %2473 = vmatmul.mubr.msk.f32.gmra.mxu0 %vm70_vm0, %v25_v22 }
  0x27   :  { %213 = vmatprep.mubr.f32.mxu0 %v3007_v4 }
  0x28   :  { %2698 = vmatmul.mubr.msk.f32.gmra.mxu1 %vm70_vm0, %v29_v14 }
  0x2a   :  { %2474 = vmatmul.mubr.msk.f32.gmra.mxu0 %vm70_vm0, %v26_v23  ;;  %v3264_v23 = vld [vmem:[%s3656_s1] sm:$0xff] }
  0x2b   :  { %218 = vmatprep.mubr.f32.mxu0 %v3007_v4 }
  0x2e   :  { %2475 = vmatmul.mubr.msk.f32.gmra.mxu0 %vm70_vm0, %v27_v24 }
  0xca   :  { %v173_v26 = vpop.f32.mrf.mxu0 }
  0xcb   :  { %v3183_v27 = vadd.f32 %v2490_v25, %v173_v26 }
  0xcc   :  { %v175_v28 = vpop.f32.mrf.mxu0  ;;  %v225_v29 = vpop.f32.mrf.mxu1 }
  0xcd   :  { %2704 = vmatprep.mubr.msk.f32.mxu1 %vm387_vm1, %v3183_v27 }
  0xce   :  { %v178_v30 = vpop.f32.mrf.mxu0  ;;  %v3195_v33 = vpop.f32.mrf.mxu1 }
  0xcf   :  { %v3187_v31 = vadd.f32 %v2490_v25, %v178_v30 }
  0xd0   :  { %v180_v32 = vpop.f32.mrf.mxu0  ;;  %v230_v36 = vpop.f32.mrf.mxu1 }
  0xd1   :  { %500 = vrot.lane.b32.xlu1 %v3187_v31, %s3008_s12  ;;  %385 = vrot.lane.b32.xlu0 %v3187_v31, %s3009_s13 }
  0xd2   :  { %v183_v34 = vpop.f32.mrf.mxu0  ;;  %v3205_v38 = vpop.f32.mrf.mxu1 }
  0xd3   :  { %v3201_v35 = vadd.f32 %v2490_v25, %v183_v34 }
  0xd4   :  { %v3203_v37 = vpop.f32.mrf.mxu0  ;;  %v2684_v41 = vpop.f32.mrf.mxu1 }
  0xd5   :  { %498 = vrot.lane.b32.xlu1 %v3183_v27, %s3008_s12  ;;  %383 = vrot.lane.b32.xlu0 %v3183_v27, %s3009_s13 }
  0xd6   :  { %v189_v39 = vpop.f32.mrf.mxu0  ;;  %v300_v43 = vpop.f32.mrf.mxu1 }
  0xd7   :  { %v3209_v40 = vadd.f32 %v2490_v25, %v189_v39 }
  0xd8   :  { %v3211_v42 = vpop.f32.mrf.mxu0  ;;  %v2687_v45 = vpop.f32.mrf.mxu1 }
  0xd9   :  { %496 = vrot.lane.b32.xlu1 %v3187_v31, %s3010_s14  ;;  %494 = vrot.lane.b32.xlu0 %v3183_v27, %s3010_s14 }
  0xda   :  { %v195_v44 = vpop.f32.mrf.mxu0  ;;  %v308_v47 = vpop.f32.mrf.mxu1 }
  0xdc   :  { %v3217_v46 = vpop.f32.mrf.mxu0  ;;  %v2690_v49 = vpop.f32.mrf.mxu1 }
  0xdd   :  { %787 = vrot.lane.b32.xlu1 %v3183_v27, %s3011_s15  ;;  %789 = vrot.lane.b32.xlu0 %v3187_v31, %s3011_s15 }
  0xde   :  { %v200_v48 = vpop.f32.mrf.mxu0  ;;  %v316_v51 = vpop.f32.mrf.mxu1 }
  0xe0   :  { %v3219_v50 = vpop.f32.mrf.mxu0  ;;  %v2693_v53 = vpop.f32.mrf.mxu1 }
  0xe1   :  { %785 = vrot.lane.b32.xlu1 %v3187_v31, %s3012_s16  ;;  %783 = vrot.lane.b32.xlu0 %v3183_v27, %s3012_s16 }
  0xe2   :  { %v205_v52 = vpop.f32.mrf.mxu0  ;;  %v324_v55 = vpop.f32.mrf.mxu1 }
  0xe4   :  { %v3221_v54 = vpop.f32.mrf.mxu0  ;;  %v3245_v7 = vpop.f32.mrf.mxu1 }
  0xe6   :  { %v210_v56 = vpop.f32.mrf.mxu0  ;;  %v3247_v8 = vpop.f32.mrf.mxu1 }
  0xe8   :  { %v3241_v3 = vpop.f32.mrf.mxu0  ;;  %v3249_v9 = vpop.f32.mrf.mxu1 }
  0xea   :  { %v215_v4 = vpop.f32.mrf.mxu0  ;;  %v3251_v10 = vpop.f32.mrf.mxu1 }
  0xec   :  { %v3243_v5 = vpop.f32.mrf.mxu0 }
  0xee   :  { %v220_v6 = vpop.f32.mrf.mxu0 }
  0xf0   :  { %v3258_v21 = vpop.f32.mrf.mxu0 }
 0x143   :  { %v501_v57 = vpop.permute.xlu1 %500  ;;  %v386_v58 = vpop.permute.xlu0 %385 }
 0x144   :  { %2700 = vmatprep.subr.msk.mxu1 %vm387_vm1, %v386_v58 }
 0x145   :  { %2701 = vmatpush3.xpose.msk.msra.mxu1 %vm387_vm1, %v386_v58 }
 0x147   :  { %v499_v59 = vpop.permute.xlu1 %498  ;;  %v384_v60 = vpop.permute.xlu0 %383 }
 0x148   :  { %2702 = vmatprep.subr.msk.mxu1 %vm387_vm1, %v384_v60 }
 0x149   :  { %2703 = vmatpush3.xpose.msk.msra.mxu1 %vm387_vm1, %v384_v60 }
 0x14a   :  { %2707 = vmatprep.subr.msk.mxu1 %vm387_vm1, %v501_v57 }
 0x14b   :  { %v497_v61 = vpop.permute.xlu1 %496  ;;  %v495_v62 = vpop.permute.xlu0 %494 }
 0x14c   :  { %2705 = vmatmul.mubr.msk.f32.vlgmr.msra.gmra.mxu1 %vm387_vm1, %v3187_v31 }
 0x14d   :  { %2708 = vmatpush3.xpose.msk.msra.mxu1 %vm387_vm1, %v501_v57  ;;  %2711 = vmatprep.mubr.msk.f32.mxu1 %vm387_vm1, %v495_v62 }
 0x14e   :  { %2709 = vmatprep.subr.msk.mxu1 %vm387_vm1, %v499_v59 }
 0x14f   :  { %v790_v63 = vpop.permute.xlu0 %789  ;;  %v788_v0 = vpop.permute.xlu1 %787 }
 0x150   :  { %2728 = vmatprep.subr.msk.mxu0 %vm387_vm1, %v790_v63 }
 0x151   :  { %2710 = vmatpush3.xpose.msk.msra.mxu1 %vm387_vm1, %v499_v59  ;;  %2729 = vmatpush3.xpose.msk.msra.mxu0 %vm387_vm1, %v790_v63 }
 0x152   :  { %2730 = vmatprep.subr.msk.mxu0 %vm387_vm1, %v788_v0 }
 0x153   :  { %v784_v1 = vpop.permute.xlu0 %783  ;;  %v786_v2 = vpop.permute.xlu1 %785 }
 0x154   :  { %2712 = vmatmul.mubr.msk.f32.vlgmr.msra.gmra.mxu1 %vm387_vm1, %v497_v61  ;;  %2732 = vmatprep.mubr.msk.f32.mxu0 %vm387_vm1, %v784_v1 }
 0x155   :  { %2731 = vmatpush3.xpose.msk.msra.mxu0 %vm387_vm1, %v788_v0 }
 0x158   :  { %2733 = vmatmul.mubr.msk.f32.vlgmr.msra.gmra.mxu0 %vm387_vm1, %v786_v2 }
 0x20c   :  { %v2706_v12 = vpop.f32.mrf.mxu1 }
 0x20d   :  { %v468_v36 = vadd.f32 %v2706_v12, %v3256_v19 }
 0x20e   :  { %v462_v14 = vpop.f32.mrf.mxu1 }
 0x20f   :  { %v463_v29 = vadd.f32 %v462_v14, %v3264_v23  ;;  %v475_v44 = vsel %vm471_vm2, %v468_v36, -inf }
 0x211   :  { %v472_v39 = vsel %vm471_vm2, %v463_v29, -inf }
 0x214   :  { %v2713_v20 = vpop.f32.mrf.mxu1 }
 0x215   :  { %v582_v22 = vadd.f32 %v2713_v20, %v3256_v19 }
 0x216   :  { %v576_v24 = vpop.f32.mrf.mxu1 }
 0x217   :  { %v3267_v25 = vadd.f32 %v576_v24, %v3264_v23  ;;  %v588_v26 = vsel %vm471_vm2, %v582_v22, -inf }
 0x218   :  { %589 = vmax.xlane.f32.xlu1 %v588_v26  ;;  %v2734_v28 = vpop.f32.mrf.mxu0 }
 0x219   :  { %v585_v30 = vsel %vm471_vm2, %v3267_v25, -inf  ;;  %v871_v43 = vadd.f32 %v2734_v28, %v3256_v19 }
 0x21a   :  { %586 = vmax.xlane.f32.xlu0 %v585_v30  ;;  %v865_v32 = vpop.f32.mrf.mxu0 }
 0x21b   :  { %v866_v34 = vadd.f32 %v865_v32, %v3264_v23  ;;  %v877_v45 = vsel %vm471_vm2, %v871_v43, -inf }
 0x21d   :  { %v874_v41 = vsel %vm471_vm2, %v866_v34, -inf }
 0x21e   :  { %473 = vmax.xlane.f32.xlu0 %v472_v39  ;;  %875 = vmax.xlane.f32.xlu1 %v874_v41 }
 0x222   :  { %476 = vmax.xlane.f32.xlu0 %v475_v44 }
 0x226   :  { %878 = vmax.xlane.f32.xlu0 %v877_v45 }
 0x22f   :  { %611 = vrot.lane.b32.xlu1 %v3209_v40, %s3013_s21 }
 0x2a1   :  { %v590_v47 = vpop.xlane.xlu1 %589 }
 0x2a2   :  { %v592_v60 = vsub.f32 %v582_v22, %v590_v47 }
 0x2a3   :  { %v587_v48 = vpop.xlane.xlu0 %586 }
 0x2a4   :  { %v595_v0 = vmul.f32 1.442695, %v592_v60 }
 0x2a7   :  { %v474_v49 = vpop.xlane.xlu0 %473  ;;  %v876_v51 = vpop.xlane.xlu1 %875 }
 0x2a8   :  { %v478_v52 = vsub.f32 %v463_v29, %v474_v49  ;;  %v880_v53 = vsub.f32 %v866_v34, %v876_v51  ;;  %v591_v29 = vsub.f32 %v3267_v25, %v587_v48 }
 0x2aa   :  { %v480_v55 = vmul.f32 1.442695, %v478_v52  ;;  %v882_v56 = vmul.f32 1.442695, %v880_v53  ;;  %v593_v30 = vmul.f32 1.442695, %v591_v29 }
 0x2ab   :  { %v477_v57 = vpop.xlane.xlu0 %476  ;;  %v612_v58 = vpop.permute.xlu1 %611  ;;  %v3312_v53 = vld [vmem:[%s3657_s2 + $0x88] ss:$0 sm:$0xff] }
 0x2ac   :  { %2909 = vpow2.f32 %v480_v55  ;;  %v479_v59 = vsub.f32 %v468_v36, %v477_v57  ;;  %2714 = vmatprep.subr.mxu1 %v612_v58 }
 0x2ad   :  { %2715 = vmatpush3.msra.mxu1 %v612_v58  ;;  %2911 = vpow2.f32 %v882_v56  ;;  %v364_v56 = vadd.f32 %v3312_v53, %v3211_v42 }
 0x2ae   :  { %v482_v61 = vmul.f32 1.442695, %v479_v59 }
 0x2af   :  { %v879_v62 = vpop.xlane.xlu0 %878 }
 0x2b0   :  { %2913 = vpow2.f32 %v482_v61  ;;  %v881_v63 = vsub.f32 %v871_v43, %v879_v62  ;;  %v362_v61 = vadd.f32 %v3312_v53, %v3203_v37 }
 0x2b2   :  { %v884_v1 = vmul.f32 1.442695, %v881_v63 }
 0x2b4   :  { %2915 = vpow2.f32 %v884_v1 }
 0x2b5   :  { %2917 = vpow2.f32 %v595_v0 }
 0x2b6   :  { %2919 = vpow2.f32 %v593_v30 }
 0x2b9   :  { %v2910_v2 = vpop.eup %2909 }
 0x2ba   :  { %v484_v4 = vsel %vm471_vm2, %v2910_v2, 0.0  ;;  %v3283_v6 = vpop.eup %2911 }
 0x2bb   :  { %485 = vadd.xlane.f32.xlu1 %v484_v4  ;;  %v886_v20 = vsel %vm471_vm2, %v3283_v6, 0.0 }
 0x2bd   :  { %v2914_v12 = vpop.eup %2913 }
 0x2be   :  { %v487_v14 = vsel %vm471_vm2, %v2914_v12, 0.0 }
 0x2bf   :  { %488 = vadd.xlane.f32.xlu0 %v487_v14  ;;  %887 = vadd.xlane.f32.xlu1 %v886_v20 }
 0x2c1   :  { %v3288_v22 = vpop.eup %2915 }
 0x2c2   :  { %v889_v24 = vsel %vm471_vm2, %v3288_v22, 0.0  ;;  %v2918_v26 = vpop.eup %2917 }
 0x2c3   :  { %890 = vadd.xlane.f32.xlu0 %v889_v24  ;;  %v600_v28 = vsel %vm471_vm2, %v2918_v26, 0.0  ;;  %v2920_v32 = vpop.eup %2919 }
 0x2c4   :  { %v597_v34 = vsel %vm471_vm2, %v2920_v32, 0.0 }
 0x2c7   :  { %601 = vadd.xlane.f32.xlu0 %v600_v28 }
 0x2d0   :  { %698 = vrot.lane.b32.xlu1 %v3209_v40, %s3014_s22 }
 0x2dd   :  { %609 = vrot.lane.b32.xlu0 %v3201_v35, %s3013_s21 }
 0x2e1   :  { %985 = vrot.lane.b32.xlu0 %v3187_v31, %s3015_s23 }
 0x2e5   :  { %979 = vrot.lane.b32.xlu0 %v3183_v27, %s3016_s24 }
 0x2f4   :  { %598 = vadd.xlane.f32.xlu1 %v597_v34 }
 0x305   :  { %696 = vrot.lane.b32.xlu1 %v3201_v35, %s3014_s22 }
 0x309   :  { %983 = vrot.lane.b32.xlu1 %v3183_v27, %s3015_s23 }
 0x30d   :  { %981 = vrot.lane.b32.xlu1 %v3187_v31, %s3016_s24 }
 0x344   :  { %v486_v25 = vpop.xlane.xlu1 %485 }
 0x345   :  { %2921 = vrcp.f32 %v486_v25 }
 0x348   :  { %v489_v40 = vpop.xlane.xlu0 %488  ;;  %v888_v39 = vpop.xlane.xlu1 %887 }
 0x34c   :  { %v891_v36 = vpop.xlane.xlu0 %890  ;;  %v699_v44 = vpop.permute.xlu1 %698 }
 0x350   :  { %v602_v41 = vpop.xlane.xlu0 %601 }
 0x351   :  { %2923 = vrcp.f32 %v602_v41 }
 0x352   :  { %v2922_v27 = vpop.eup %2921 }
 0x353   :  { %v492_v51 = vmul.f32 %v2922_v27, %v2910_v2 }
 0x354   :  { %v610_v43 = vpop.permute.xlu0 %609 }
 0x355   :  { %2716 = vmatprep.subr.mxu1 %v610_v43 }
 0x356   :  { %2717 = vmatpush3.msra.mxu1 %v610_v43 }
 0x357   :  { %2721 = vmatprep.subr.mxu1 %v699_v44 }
 0x358   :  { %v986_v57 = vpop.permute.xlu0 %985 }
 0x35c   :  { %v980_v42 = vpop.permute.xlu0 %979 }
 0x35e   :  { %v2924_v35 = vpop.eup %2923 }
 0x35f   :  { %v606_v48 = vmul.f32 %v2924_v35, %v2918_v26 }
 0x37d   :  { %v599_v45 = vpop.xlane.xlu1 %598 }
 0x37e   :  { %2925 = vrcp.f32 %v599_v45 }
 0x37f   :  { %2927 = vrcp.f32 %v489_v40 }
 0x380   :  { %2929 = vrcp.f32 %v888_v39 }
 0x381   :  { %2931 = vrcp.f32 %v891_v36  ;;  %v697_v55 = vpop.permute.xlu1 %696 }
 0x385   :  { %v984_v63 = vpop.permute.xlu1 %983 }
 0x389   :  { %v982_v37 = vpop.permute.xlu1 %981 }
 0x38b   :  { %v2926_v31 = vpop.eup %2925 }
 0x38c   :  { %v605_v47 = vmul.f32 %v2926_v31, %v2920_v32  ;;  %v2928_v49 = vpop.eup %2927 }
 0x38d   :  { %v2930_v52 = vpop.eup %2929  ;;  %v493_v58 = vmul.f32 %v2928_v49, %v2914_v12 }
 0x38e   :  { %2718 = vmatprep.mubr.msk.f32.mxu1 %vm471_vm2, %v605_v47  ;;  %v2932_v59 = vpop.eup %2931  ;;  %v894_v60 = vmul.f32 %v2930_v52, %v3283_v6 }
 0x38f   :  { %2719 = vmatmul.mubr.msk.f32.vlgmr.msra.gmra.mxu1 %vm471_vm2, %v606_v48  ;;  %v895_v62 = vmul.f32 %v2932_v59, %v3288_v22 }
 0x390   :  { %2722 = vmatpush3.msra.mxu1 %v699_v44  ;;  %2725 = vmatprep.mubr.msk.f32.mxu1 %vm471_vm2, %v492_v51 }
 0x391   :  { %2723 = vmatprep.subr.mxu1 %v697_v55 }
 0x392   :  { %2724 = vmatpush3.msra.mxu1 %v697_v55  ;;  %v1185_v55 = vlaneseq }
 0x393   :  { %2735 = vmatprep.subr.mxu1 %v364_v56  ;;  %2726 = vmatmul.mubr.msk.f32.vlgmr.msra.gmra.mxu1 %vm471_vm2, %v493_v58  ;;  %v3346_v58 = vld [vmem:[%s3658_s3 + $0x40] sm:$0xff] }
 0x394   :  { %2736 = vmatpush3.msra.mxu1 %v364_v56  ;;  %2739 = vmatprep.mubr.msk.f32.mxu1 %vm471_vm2, %v894_v60 }
 0x395   :  { %2737 = vmatprep.subr.mxu1 %v362_v61 }
 0x396   :  { %2738 = vmatpush3.msra.mxu1 %v362_v61 }
 0x397   :  { %2742 = vmatprep.subr.msk.mxu1 %vm387_vm1, %v986_v57  ;;  %2740 = vmatmul.mubr.msk.f32.vlgmr.msra.gmra.mxu1 %vm471_vm2, %v895_v62 }
 0x398   :  { %2743 = vmatpush3.xpose.msk.msra.mxu1 %vm387_vm1, %v986_v57  ;;  %2746 = vmatprep.mubr.msk.f32.mxu1 %vm387_vm1, %v980_v42 }
 0x399   :  { %2744 = vmatprep.subr.msk.mxu1 %vm387_vm1, %v984_v63 }
 0x39c   :  { %2745 = vmatpush3.xpose.msk.msra.mxu1 %vm387_vm1, %v984_v63 }
 0x39f   :  { %2747 = vmatmul.mubr.msk.f32.vlgmr.msra.gmra.mxu1 %vm387_vm1, %v982_v37 }
 0x44f   :  { %v2720_v0 = vpop.f32.mrf.mxu1 }
 0x451   :  { %v687_v1 = vpop.f32.mrf.mxu1 }
 0x453   :  { %v2727_v2 = vpop.f32.mrf.mxu1 }
 0x454   :  { %v780_v4 = vadd.f32 %v2727_v2, %v2720_v0 }
 0x455   :  { %v774_v6 = vpop.f32.mrf.mxu1 }
 0x456   :  { %v775_v12 = vadd.f32 %v774_v6, %v687_v1 }
 0x457   :  { %v2741_v14 = vpop.f32.mrf.mxu1 }
 0x458   :  { %v978_v20 = vadd.f32 %v2741_v14, %v780_v4 }
 0x459   :  { %v968_v22 = vpop.f32.mrf.mxu1 }
 0x45a   :  { %v977_v24 = vadd.f32 %v968_v22, %v775_v12 }
 0x45f   :  { %v2748_v26 = vpop.f32.mrf.mxu1 }
 0x460   :  { %v1067_v28 = vadd.f32 %v2748_v26, %v3256_v19 }
 0x461   :  { %v1061_v29 = vpop.f32.mrf.mxu1 }
 0x462   :  { %v1062_v30 = vadd.f32 %v1061_v29, %v3264_v23  ;;  %v1073_v32 = vsel %vm471_vm2, %v1067_v28, -inf }
 0x463   :  { %1074 = vmax.xlane.f32.xlu1 %v1073_v32 }
 0x464   :  { %v1070_v34 = vsel %vm471_vm2, %v1062_v30, -inf }
 0x465   :  { %1071 = vmax.xlane.f32.xlu0 %v1070_v34 }
 0x474   :  { %1096 = vrot.lane.b32.xlu1 %v364_v56, %s3009_s13  ;;  %v3340_v56 = vshrl.u32 %v1185_v55, 7 }
 0x476   :  { %v1187_v57 = vsub.s32 7, %v3340_v56 }
 0x4ec   :  { %v1075_v40 = vpop.xlane.xlu1 %1074 }
 0x4ed   :  { %v1077_v25 = vsub.f32 %v1067_v28, %v1075_v40 }
 0x4ee   :  { %v1072_v36 = vpop.xlane.xlu0 %1071 }
 0x4ef   :  { %v1080_v39 = vmul.f32 1.442695, %v1077_v25  ;;  %v1076_v41 = vsub.f32 %v1062_v30, %v1072_v36  ;;  %v3375_v30 = vadd.f32 %v3312_v53, %v3219_v50 }
 0x4f0   :  { %v1097_v43 = vpop.permute.xlu1 %1096 }
 0x4f1   :  { %2933 = vpow2.f32 %v1080_v39  ;;  %v1078_v44 = vmul.f32 1.442695, %v1076_v41  ;;  %2749 = vmatprep.subr.mxu0 %v1097_v43  ;;  %v1220_v41 = vsub.s32 0, %v3340_v56 }
 0x4f2   :  { %2750 = vmatpush3.msra.mxu0 %v1097_v43 }
 0x4f3   :  { %2935 = vpow2.f32 %v1078_v44  ;;  %v1221_v44 = vrot.slane %v3346_v58, %v1220_v41 }
 0x4fe   :  { %v2934_v19 = vpop.eup %2933 }
 0x4ff   :  { %v1085_v23 = vsel %vm471_vm2, %v2934_v19, 0.0 }
 0x500   :  { %v2936_v45 = vpop.eup %2935  ;;  %1086 = vadd.xlane.f32.xlu0 %v1085_v23 }
 0x501   :  { %v1082_v27 = vsel %vm471_vm2, %v2936_v45, 0.0 }
 0x504   :  { %1083 = vadd.xlane.f32.xlu0 %v1082_v27 }
 0x51a   :  { %1094 = vrot.lane.b32.xlu0 %v362_v61, %s3009_s13  ;;  %v1188_v61 = vrot.slane %v3346_v58, %v1187_v57 }
 0x589   :  { %v1087_v35 = vpop.xlane.xlu0 %1086 }
 0x58a   :  { %2937 = vrcp.f32 %v1087_v35 }
 0x58d   :  { %v1084_v31 = vpop.xlane.xlu0 %1083 }
 0x58e   :  { %2939 = vrcp.f32 %v1084_v31 }
 0x591   :  { %v1095_v47 = vpop.permute.xlu0 %1094 }
 0x592   :  { %2751 = vmatprep.subr.mxu0 %v1095_v47 }
 0x593   :  { %2752 = vmatpush3.msra.mxu0 %v1095_v47 }
 0x597   :  { %v2938_v48 = vpop.eup %2937 }
 0x598   :  { %v1091_v52 = vmul.f32 %v2938_v48, %v2934_v19  ;;  %v1226_v19 = vsub.s32 1, %v3340_v56 }
 0x59a   :  { %v1227_v31 = vrot.slane %v3346_v58, %v1226_v19 }
 0x59b   :  { %v2940_v49 = vpop.eup %2939 }
 0x59c   :  { %v1090_v51 = vmul.f32 %v2940_v49, %v2936_v45 }
 0x59e   :  { %2753 = vmatprep.mubr.msk.f32.mxu0 %vm471_vm2, %v1090_v51 }
 0x59f   :  { %2754 = vmatmul.mubr.msk.f32.vlgmr.msra.gmra.mxu0 %vm471_vm2, %v1091_v52 }
 0x65f   :  { %v2755_v59 = vpop.f32.mrf.mxu0 }
 0x660   :  { %v1182_v60 = vadd.f32 %v2755_v59, %v978_v20 }
 0x661   :  { %v1172_v62 = vpop.f32.mrf.mxu0 }
 0x662   :  { %v1184_v42 = vadd.f32 %v1182_v60, %v3136_v18  ;;  %v1181_v63 = vadd.f32 %v1172_v62, %v977_v24 }
 0x664   :  { %v1183_v37 = vadd.f32 %v1181_v63, %v3123_v17  ;;  %v1190_v0 = vadd.f32 %v1188_v61, %v1184_v42 }
 0x666   :  { %v1194_v1 = vsel %vm70_vm0, %v1190_v0, 0.0  ;;  %v1189_v2 = vadd.f32 %v1188_v61, %v1183_v37  ;;  %v35_v37 = vld [vmem:[%s3656_s1 + $0x28] sm:$0xff] }
 0x667   :  { %1195 = vadd.xlane.f32.xlu0 %v1194_v1  ;;  %v34_v1 = vld [vmem:[%s3656_s1 + $0x20] sm:$0xff] }
 0x668   :  { %v1191_v4 = vsel %vm70_vm0, %v1189_v2, 0.0 }
 0x669   :  { %1192 = vadd.xlane.f32.xlu1 %v1191_v4 }
 0x67a   :  { %1240 = vrot.lane.b32.xlu1 %v3082_v11, %s3013_s21  ;;  %v3363_v11 = vadd.f32 %v3312_v53, %v3241_v3 }
 0x67e   :  { %1236 = vrot.lane.b32.xlu1 %v3105_v15, %s3013_s21  ;;  %v3371_v15 = vld [vmem:[%s3657_s2 + $0x90] ss:$0 sm:$0xff] }
 0x6f0   :  { %v1196_v6 = vpop.xlane.xlu0 %1195 }
 0x6f1   :  { %v1199_v12 = vmul.f32 0.03125, %v1196_v6 }
 0x6f2   :  { %v1193_v18 = vpop.xlane.xlu1 %1192 }
 0x6f3   :  { %v1201_v14 = vsub.f32 %v1190_v0, %v1199_v12  ;;  %v1198_v20 = vmul.f32 0.03125, %v1193_v18 }
 0x6f5   :  { %v1200_v17 = vsub.f32 %v1189_v2, %v1198_v20  ;;  %v1203_v22 = vmul.f32 %v1201_v14, %v1201_v14 }
 0x6f6   :  { %v1241_v24 = vpop.permute.xlu1 %1240 }
 0x6f7   :  { %v1207_v26 = vsel %vm70_vm0, %v1203_v22, 0.0  ;;  %v1202_v28 = vmul.f32 %v1200_v17, %v1200_v17  ;;  %2756 = vmatprep.subr.mxu0 %v1241_v24 }
 0x6f8   :  { %1208 = vadd.xlane.f32.xlu0 %v1207_v26  ;;  %2757 = vmatpush3.msra.mxu0 %v1241_v24 }
 0x6f9   :  { %v1204_v29 = vsel %vm70_vm0, %v1202_v28, 0.0 }
 0x6fa   :  { %1205 = vadd.xlane.f32.xlu1 %v1204_v29  ;;  %v1237_v3 = vpop.permute.xlu1 %1236 }
 0x70b   :  { %1234 = vrot.lane.b32.xlu1 %v3113_v16, %s3013_s21  ;;  %v3387_v16 = vadd.f32 %v3312_v53, %v3217_v46 }
 0x70e   :  { %1238 = vrot.lane.b32.xlu0 %v3093_v13, %s3013_s21  ;;  %v3382_v13 = vadd.f32 %v3312_v53, %v3221_v54 }
 0x70f   :  { %1464 = vrot.lane.b32.xlu1 %v3363_v11, %s3017_s29 }
 0x712   :  { %1247 = vrot.lane.b32.xlu0 %v3371_v15, %s3013_s21 }
 0x713   :  { %1460 = vrot.lane.b32.xlu1 %v3375_v30, %s3017_s29 }
 0x716   :  { %1462 = vrot.lane.b32.xlu0 %v3382_v13, %s3017_s29 }
 0x71a   :  { %1458 = vrot.lane.b32.xlu0 %v3387_v16, %s3017_s29 }
 0x781   :  { %v1209_v50 = vpop.xlane.xlu0 %1208 }
 0x782   :  { %v1211_v32 = vmul.f32 0.03125, %v1209_v50 }
 0x783   :  { %v1206_v34 = vpop.xlane.xlu1 %1205 }
 0x784   :  { %v1213_v40 = vadd.f32 1e-05, %v1211_v32  ;;  %v1210_v25 = vmul.f32 0.03125, %v1206_v34 }
 0x785   :  { %v1239_v36 = vpop.permute.xlu0 %1238 }
 0x786   :  { %2941 = vrsqrt.f32 %v1213_v40  ;;  %v1212_v39 = vadd.f32 1e-05, %v1210_v25  ;;  %2758 = vmatprep.subr.mxu0 %v1239_v36 }
 0x787   :  { %2759 = vmatpush3.msra.mxu0 %v1239_v36  ;;  %v1235_v54 = vpop.permute.xlu1 %1234 }
 0x788   :  { %2943 = vrsqrt.f32 %v1212_v39  ;;  %2760 = vmatprep.subr.mxu0 %v1237_v3 }
 0x789   :  { %2761 = vmatpush3.msra.mxu0 %v1237_v3  ;;  %v1248_v47 = vpop.permute.xlu0 %1247 }
 0x78a   :  { %2762 = vmatprep.subr.mxu0 %v1235_v54 }
 0x78b   :  { %2763 = vmatpush3.msra.mxu0 %v1235_v54  ;;  %v1465_v46 = vpop.permute.xlu1 %1464  ;;  %v3458_v54 = vadd.f32 %v3249_v9, %v3371_v15  ;;  %v3472_v9 = vadd.f32 %v3245_v7, %v3371_v15 }
 0x78c   :  { %2778 = vmatprep.subr.msk.mxu0 %vm387_vm1, %v1465_v46 }
 0x78d   :  { %v1463_v52 = vpop.permute.xlu0 %1462 }
 0x78f   :  { %v1461_v55 = vpop.permute.xlu1 %1460 }
 0x791   :  { %v1459_v57 = vpop.permute.xlu0 %1458 }
 0x793   :  { %v2942_v43 = vpop.eup %2941 }
 0x794   :  { %v1217_v23 = vmul.f32 %v2942_v43, %v1201_v14  ;;  %v3465_v43 = vadd.f32 %v3371_v15, %v3251_v10 }
 0x795   :  { %v2944_v45 = vpop.eup %2943 }
 0x796   :  { %v1216_v27 = vmul.f32 %v2944_v45, %v1200_v17  ;;  %v1223_v35 = vmul.f32 %v1221_v44, %v1217_v23  ;;  %v3478_v23 = vadd.f32 %v3371_v15, %v3247_v8 }
 0x798   :  { %v1222_v48 = vmul.f32 %v1221_v44, %v1216_v27  ;;  %v3399_v51 = vadd.f32 %v1227_v31, %v1223_v35 }
 0x79a   :  { %v3397_v49 = vadd.f32 %v1227_v31, %v1222_v48  ;;  %v33_v31 = vld [vmem:[%s3656_s1 + $0x18] sm:$0xff]  ;;  %v32_v48 = vld [vmem:[%s3656_s1 + $0x10] sm:$0xff] }
 0x79c   :  { %2764 = vmatprep.mubr.msk.f32.mxu0 %vm70_vm0, %v3397_v49 }
 0x79d   :  { %2765 = vmatmul.mubr.msk.f32.vlgmr.msra.gmra.mxu0 %vm70_vm0, %v3399_v51 }
 0x79e   :  { %2779 = vmatpush3.xpose.msk.msra.mxu0 %vm387_vm1, %v1465_v46 }
 0x79f   :  { %2780 = vmatprep.subr.msk.mxu0 %vm387_vm1, %v1463_v52 }
 0x7a2   :  { %2781 = vmatpush3.xpose.msk.msra.mxu0 %vm387_vm1, %v1463_v52 }
 0x7a3   :  { %2782 = vmatprep.subr.msk.mxu0 %vm387_vm1, %v1461_v55 }
 0x7a6   :  { %2783 = vmatpush3.xpose.msk.msra.mxu0 %vm387_vm1, %v1461_v55 }
 0x7a7   :  { %2784 = vmatprep.subr.msk.mxu0 %vm387_vm1, %v1459_v57 }
 0x7aa   :  { %2785 = vmatpush3.xpose.msk.msra.mxu0 %vm387_vm1, %v1459_v57 }
 0x85d   :  { %v2766_v59 = vpop.f32.mrf.mxu0 }
 0x85e   :  { %v3412_v60 = vadd.f32 %v2766_v59, %v1248_v47 }
 0x85f   :  { %v1322_v61 = vpop.f32.mrf.mxu0 }
 0x860   :  { %v3414_v62 = vadd.f32 %v1322_v61, %v1248_v47  ;;  %1456 = vrot.lane.b32.xlu0 %v3412_v60, %s3010_s14 }
 0x862   :  { %1454 = vrot.lane.b32.xlu1 %v3414_v62, %s3010_s14  ;;  %2775 = vmatprep.mubr.msk.f32.mxu1 %vm387_vm1, %v3414_v62 }
 0x8d2   :  { %v1457_v63 = vpop.permute.xlu0 %1456 }
 0x8d4   :  { %v1455_v42 = vpop.permute.xlu1 %1454 }
 0x8d5   :  { %2786 = vmatprep.mubr.msk.f32.mxu0 %vm387_vm1, %v1455_v42 }
 0x8d6   :  { %2787 = vmatmul.mubr.msk.f32.vlgmr.msra.gmra.mxu0 %vm387_vm1, %v1457_v63 }
 0x996   :  { %v2788_v0 = vpop.f32.mrf.mxu0 }
 0x997   :  { %v1550_v2 = vadd.f32 %v2788_v0, %v35_v37  ;;  %v37_v37 = vld [vmem:[%s3656_s1 + $0x38] sm:$0xff] }
 0x998   :  { %v1544_v4 = vpop.f32.mrf.mxu0 }
 0x999   :  { %v1545_v6 = vadd.f32 %v1544_v4, %v34_v1  ;;  %v1556_v12 = vsel %vm70_vm0, %v1550_v2, -inf  ;;  %v36_v1 = vld [vmem:[%s3656_s1 + $0x30] sm:$0xff] }
 0x99a   :  { %1557 = vmax.xlane.f32.xlu0 %v1556_v12 }
 0x99b   :  { %v1553_v18 = vsel %vm70_vm0, %v1545_v6, -inf }
 0x99c   :  { %1554 = vmax.xlane.f32.xlu1 %v1553_v18 }
 0x9ad   :  { %1339 = vrot.lane.b32.xlu1 %v3382_v13, %s3014_s22 }
 0x9b0   :  { %1341 = vrot.lane.b32.xlu0 %v3363_v11, %s3014_s22 }
 0x9b1   :  { %1337 = vrot.lane.b32.xlu1 %v3375_v30, %s3014_s22 }
 0xa23   :  { %v1558_v14 = vpop.xlane.xlu0 %1557 }
 0xa24   :  { %v1560_v20 = vsub.f32 %v1550_v2, %v1558_v14 }
 0xa25   :  { %v1555_v17 = vpop.xlane.xlu1 %1554 }
 0xa26   :  { %v1563_v22 = vmul.f32 1.442695, %v1560_v20  ;;  %v1559_v24 = vsub.f32 %v1545_v6, %v1555_v17 }
 0xa27   :  { %v1342_v26 = vpop.permute.xlu0 %1341 }
 0xa28   :  { %2945 = vpow2.f32 %v1563_v22  ;;  %v1561_v28 = vmul.f32 1.442695, %v1559_v24  ;;  %2767 = vmatprep.subr.msk.mxu1 %vm387_vm1, %v1342_v26 }
 0xa29   :  { %2768 = vmatpush3.xpose.msk.msra.mxu1 %vm387_vm1, %v1342_v26  ;;  %v1340_v29 = vpop.permute.xlu1 %1339 }
 0xa2a   :  { %2947 = vpow2.f32 %v1561_v28  ;;  %2769 = vmatprep.subr.msk.mxu1 %vm387_vm1, %v1340_v29 }
 0xa2d   :  { %2770 = vmatpush3.xpose.msk.msra.mxu1 %vm387_vm1, %v1340_v29  ;;  %v1338_v3 = vpop.permute.xlu1 %1337 }
 0xa2e   :  { %2771 = vmatprep.subr.msk.mxu1 %vm387_vm1, %v1338_v3 }
 0xa31   :  { %2772 = vmatpush3.xpose.msk.msra.mxu1 %vm387_vm1, %v1338_v3 }
 0xa35   :  { %v2946_v50 = vpop.eup %2945 }
 0xa36   :  { %v1568_v32 = vsel %vm70_vm0, %v2946_v50, 0.0 }
 0xa37   :  { %v2948_v34 = vpop.eup %2947  ;;  %1569 = vadd.xlane.f32.xlu1 %v1568_v32  ;;  %v377_v32 = vadd.f32 %v3312_v53, %v3195_v33 }
 0xa38   :  { %v1565_v40 = vsel %vm70_vm0, %v2948_v34, 0.0 }
 0xa39   :  { %1566 = vadd.xlane.f32.xlu0 %v1565_v40  ;;  %v379_v40 = vadd.f32 %v3312_v53, %v3205_v38 }
 0xa48   :  { %1763 = vrot.lane.b32.xlu1 %v3363_v11, %s3018_s10 }
 0xa4c   :  { %1759 = vrot.lane.b32.xlu1 %v3375_v30, %s3018_s10 }
 0xa4f   :  { %1335 = vrot.lane.b32.xlu0 %v3387_v16, %s3014_s22 }
 0xa50   :  { %1753 = vrot.lane.b32.xlu1 %v3414_v62, %s3012_s16 }
 0xa53   :  { %1761 = vrot.lane.b32.xlu0 %v3382_v13, %s3018_s10 }
 0xa57   :  { %1757 = vrot.lane.b32.xlu0 %v3387_v16, %s3018_s10 }
 0xa5b   :  { %1755 = vrot.lane.b32.xlu0 %v3412_v60, %s3012_s16 }
 0xac0   :  { %v1570_v25 = vpop.xlane.xlu1 %1569 }
 0xac1   :  { %2949 = vrcp.f32 %v1570_v25  ;;  %v373_v25 = vadd.f32 %v3312_v53, %v3243_v5 }
 0xac2   :  { %v1567_v36 = vpop.xlane.xlu0 %1566 }
 0xac3   :  { %2951 = vrcp.f32 %v1567_v36 }
 0xac4   :  { %v1764_v46 = vpop.permute.xlu1 %1763 }
 0xac6   :  { %v1336_v39 = vpop.permute.xlu0 %1335 }
 0xac7   :  { %2773 = vmatprep.subr.msk.mxu1 %vm387_vm1, %v1336_v39 }
 0xac8   :  { %2774 = vmatpush3.xpose.msk.msra.mxu1 %vm387_vm1, %v1336_v39  ;;  %v1760_v44 = vpop.permute.xlu1 %1759 }
 0xac9   :  { %2789 = vmatprep.subr.mxu1 %v3458_v54 }
 0xaca   :  { %v1762_v8 = vpop.permute.xlu0 %1761 }
 0xacb   :  { %2776 = vmatmul.mubr.msk.f32.vlgmr.msra.gmra.mxu1 %vm387_vm1, %v3412_v60 }
 0xacc   :  { %2790 = vmatpush3.msra.mxu1 %v3458_v54  ;;  %v1754_v27 = vpop.permute.xlu1 %1753 }
 0xacd   :  { %2791 = vmatprep.subr.mxu1 %v3465_v43 }
 0xace   :  { %2792 = vmatpush3.msra.mxu1 %v3465_v43  ;;  %v2950_v19 = vpop.eup %2949  ;;  %v1758_v15 = vpop.permute.xlu0 %1757 }
 0xacf   :  { %2793 = vmatprep.subr.mxu1 %v3472_v9  ;;  %v1574_v7 = vmul.f32 %v2950_v19, %v2946_v50 }
 0xad0   :  { %v2952_v10 = vpop.eup %2951  ;;  %2794 = vmatpush3.msra.mxu1 %v3472_v9 }
 0xad1   :  { %2795 = vmatprep.subr.mxu1 %v3478_v23  ;;  %v1573_v45 = vmul.f32 %v2952_v10, %v2948_v34  ;;  %v375_v34 = vadd.f32 %v3312_v53, %v3258_v21 }
 0xad2   :  { %2796 = vmatpush3.msra.mxu1 %v3478_v23  ;;  %v1756_v35 = vpop.permute.xlu0 %1755 }
 0xad3   :  { %2797 = vmatprep.mubr.msk.f32.mxu1 %vm70_vm0, %v1573_v45  ;;  %2811 = vmatprep.subr.msk.mxu1 %vm387_vm1, %v1764_v46 }
 0xad4   :  { %2798 = vmatmul.mubr.msk.f32.vlgmr.msra.gmra.mxu1 %vm70_vm0, %v1574_v7 }
 0xad5   :  { %2812 = vmatpush3.xpose.msk.msra.mxu1 %vm387_vm1, %v1764_v46  ;;  %2819 = vmatprep.mubr.msk.f32.mxu1 %vm387_vm1, %v1754_v27 }
 0xad6   :  { %2813 = vmatprep.subr.msk.mxu1 %vm387_vm1, %v1762_v8 }
 0xad9   :  { %2814 = vmatpush3.xpose.msk.msra.mxu1 %vm387_vm1, %v1762_v8 }
 0xada   :  { %2815 = vmatprep.subr.msk.mxu1 %vm387_vm1, %v1760_v44 }
 0xadd   :  { %2816 = vmatpush3.xpose.msk.msra.mxu1 %vm387_vm1, %v1760_v44 }
 0xade   :  { %2817 = vmatprep.subr.msk.mxu1 %vm387_vm1, %v1758_v15 }
 0xae1   :  { %2818 = vmatpush3.xpose.msk.msra.mxu1 %vm387_vm1, %v1758_v15 }
 0xae4   :  { %2820 = vmatmul.mubr.msk.f32.vlgmr.msra.gmra.mxu1 %vm387_vm1, %v1756_v35 }
 0xb8b   :  { %v2777_v47 = vpop.f32.mrf.mxu1 }
 0xb8c   :  { %v1429_v52 = vadd.f32 %v2777_v47, %v33_v31 }
 0xb8d   :  { %v1423_v55 = vpop.f32.mrf.mxu1 }
 0xb8e   :  { %v1424_v57 = vadd.f32 %v1423_v55, %v32_v48  ;;  %v1435_v59 = vsel %vm70_vm0, %v1429_v52, -inf }
 0xb8f   :  { %1436 = vmax.xlane.f32.xlu0 %v1435_v59 }
 0xb90   :  { %v1432_v61 = vsel %vm70_vm0, %v1424_v57, -inf }
 0xb91   :  { %1433 = vmax.xlane.f32.xlu1 %v1432_v61 }
 0xb94   :  { %v3504_v42 = vpop.f32.mrf.mxu1 }
 0xb96   :  { %v3506_v63 = vpop.f32.mrf.mxu1 }
 0xba4   :  { %v2821_v0 = vpop.f32.mrf.mxu1 }
 0xba5   :  { %v1849_v2 = vadd.f32 %v2821_v0, %v37_v37 }
 0xba6   :  { %v1843_v4 = vpop.f32.mrf.mxu1 }
 0xba7   :  { %v1844_v6 = vadd.f32 %v1843_v4, %v36_v1  ;;  %v1855_v12 = vsel %vm70_vm0, %v1849_v2, -inf }
 0xba8   :  { %1856 = vmax.xlane.f32.xlu1 %v1855_v12 }
 0xba9   :  { %v1852_v18 = vsel %vm70_vm0, %v1844_v6, -inf }
 0xbaa   :  { %1853 = vmax.xlane.f32.xlu0 %v1852_v18 }
 0xc18   :  { %v1437_v14 = vpop.xlane.xlu0 %1436 }
 0xc19   :  { %v1439_v20 = vsub.f32 %v1429_v52, %v1437_v14 }
 0xc1a   :  { %v1434_v17 = vpop.xlane.xlu1 %1433 }
 0xc1b   :  { %v1442_v22 = vmul.f32 1.442695, %v1439_v20  ;;  %v1438_v24 = vsub.f32 %v1424_v57, %v1434_v17 }
 0xc1d   :  { %2953 = vpow2.f32 %v1442_v22  ;;  %v1440_v26 = vmul.f32 1.442695, %v1438_v24 }
 0xc1f   :  { %2955 = vpow2.f32 %v1440_v26  ;;  %v39_v26 = vld [vmem:[%s3656_s1 + $0x48] sm:$0xff] }
 0xc2a   :  { %v2954_v28 = vpop.eup %2953 }
 0xc2b   :  { %v1447_v29 = vsel %vm70_vm0, %v2954_v28, 0.0 }
 0xc2c   :  { %v2956_v3 = vpop.eup %2955  ;;  %1448 = vadd.xlane.f32.xlu1 %v1447_v29  ;;  %v38_v29 = vld [vmem:[%s3656_s1 + $0x40] sm:$0xff] }
 0xc2d   :  { %v1444_v50 = vsel %vm70_vm0, %v2956_v3, 0.0 }
 0xc2e   :  { %1445 = vadd.xlane.f32.xlu0 %v1444_v50 }
 0xc31   :  { %v1857_v21 = vpop.xlane.xlu1 %1856 }
 0xc32   :  { %v1859_v38 = vsub.f32 %v1849_v2, %v1857_v21 }
 0xc33   :  { %v1854_v33 = vpop.xlane.xlu0 %1853 }
 0xc34   :  { %v1858_v36 = vsub.f32 %v1844_v6, %v1854_v33  ;;  %v1862_v46 = vmul.f32 1.442695, %v1859_v38 }
 0xc36   :  { %v1860_v39 = vmul.f32 1.442695, %v1858_v36 }
 0xc38   :  { %2957 = vpow2.f32 %v1860_v39 }
 0xc39   :  { %2959 = vpow2.f32 %v1862_v46 }
 0xc3d   :  { %1664 = vrot.lane.b32.xlu1 %v377_v32, %s3013_s21 }
 0xc41   :  { %1662 = vrot.lane.b32.xlu1 %v375_v34, %s3013_s21 }
 0xc44   :  { %1666 = vrot.lane.b32.xlu0 %v379_v40, %s3013_s21 }
 0xc45   :  { %1884 = vrot.lane.b32.xlu1 %v3458_v54, %s3009_s13  ;;  %v2958_v44 = vpop.eup %2957 }
 0xc46   :  { %v2960_v19 = vpop.eup %2959  ;;  %v1864_v5 = vsel %vm70_vm0, %v2958_v44, 0.0 }
 0xc47   :  { %v1867_v53 = vsel %vm70_vm0, %v2960_v19, 0.0 }
 0xc48   :  { %1660 = vrot.lane.b32.xlu0 %v373_v25, %s3013_s21 }
 0xc49   :  { %1880 = vrot.lane.b32.xlu1 %v3472_v9, %s3009_s13 }
 0xc4c   :  { %1882 = vrot.lane.b32.xlu0 %v3465_v43, %s3009_s13 }
 0xc6b   :  { %1865 = vadd.xlane.f32.xlu0 %v1864_v5 }
 0xc6d   :  { %1868 = vadd.xlane.f32.xlu1 %v1867_v53 }
 0xc7e   :  { %1983 = vrot.lane.b32.xlu1 %v3363_v11, %s3019_s19 }
 0xc81   :  { %1878 = vrot.lane.b32.xlu0 %v3478_v23, %s3009_s13 }
 0xc82   :  { %1979 = vrot.lane.b32.xlu1 %v3375_v30, %s3019_s19 }
 0xc85   :  { %1981 = vrot.lane.b32.xlu0 %v3382_v13, %s3019_s19 }
 0xc86   :  { %1973 = vrot.lane.b32.xlu1 %v3414_v62, %s3016_s24 }
 0xc89   :  { %1977 = vrot.lane.b32.xlu0 %v3387_v16, %s3019_s19 }
 0xc8d   :  { %1975 = vrot.lane.b32.xlu0 %v3412_v60, %s3016_s24 }
 0xcb5   :  { %v1449_v10 = vpop.xlane.xlu1 %1448 }
 0xcb6   :  { %2961 = vrcp.f32 %v1449_v10 }
 0xcb7   :  { %v1446_v45 = vpop.xlane.xlu0 %1445 }
 0xcb8   :  { %2963 = vrcp.f32 %v1446_v45 }
 0xcb9   :  { %v1665_v11 = vpop.permute.xlu1 %1664 }
 0xcbb   :  { %v1667_v7 = vpop.permute.xlu0 %1666 }
 0xcbc   :  { %2800 = vmatprep.subr.mxu0 %v1667_v7 }
 0xcbd   :  { %2801 = vmatpush3.msra.mxu0 %v1667_v7  ;;  %v1663_v27 = vpop.permute.xlu1 %1662 }
 0xcbe   :  { %2802 = vmatprep.subr.mxu0 %v1665_v11 }
 0xcbf   :  { %2803 = vmatpush3.msra.mxu0 %v1665_v11  ;;  %v1661_v30 = vpop.permute.xlu0 %1660 }
 0xcc0   :  { %2804 = vmatprep.subr.mxu0 %v1663_v27 }
 0xcc1   :  { %2805 = vmatpush3.msra.mxu0 %v1663_v27  ;;  %v1885_v13 = vpop.permute.xlu1 %1884 }
 0xcc2   :  { %2806 = vmatprep.subr.mxu0 %v1661_v30 }
 0xcc3   :  { %2807 = vmatpush3.msra.mxu0 %v1661_v30  ;;  %v2962_v16 = vpop.eup %2961  ;;  %v1883_v15 = vpop.permute.xlu0 %1882 }
 0xcc4   :  { %2822 = vmatprep.subr.mxu0 %v1885_v13  ;;  %v1453_v8 = vmul.f32 %v2962_v16, %v2954_v28 }
 0xcc5   :  { %v2964_v60 = vpop.eup %2963  ;;  %v1881_v35 = vpop.permute.xlu1 %1880 }
 0xcc6   :  { %v1452_v62 = vmul.f32 %v2964_v60, %v2956_v3 }
 0xcc8   :  { %2808 = vmatprep.mubr.msk.f32.mxu0 %vm70_vm0, %v1452_v62 }
 0xcc9   :  { %2809 = vmatmul.mubr.msk.f32.vlgmr.msra.gmra.mxu0 %vm70_vm0, %v1453_v8 }
 0xcca   :  { %2823 = vmatpush3.msra.mxu0 %v1885_v13 }
 0xccb   :  { %2824 = vmatprep.subr.mxu0 %v1883_v15 }
 0xccc   :  { %2825 = vmatpush3.msra.mxu0 %v1883_v15 }
 0xccd   :  { %2826 = vmatprep.subr.mxu0 %v1881_v35 }
 0xcce   :  { %2827 = vmatpush3.msra.mxu0 %v1881_v35 }
 0xcf4   :  { %v1866_v31 = vpop.xlane.xlu0 %1865 }
 0xcf5   :  { %2965 = vrcp.f32 %v1866_v31 }
 0xcf6   :  { %v1869_v47 = vpop.xlane.xlu1 %1868 }
 0xcf7   :  { %2967 = vrcp.f32 %v1869_v47 }
 0xcf8   :  { %v1879_v48 = vpop.permute.xlu0 %1878 }
 0xcf9   :  { %2828 = vmatprep.subr.mxu0 %v1879_v48 }
 0xcfa   :  { %2829 = vmatpush3.msra.mxu0 %v1879_v48  ;;  %v1984_v52 = vpop.permute.xlu1 %1983 }
 0xcfb   :  { %2833 = vmatprep.subr.msk.mxu0 %vm387_vm1, %v1984_v52 }
 0xcfc   :  { %v1982_v1 = vpop.permute.xlu0 %1981 }
 0xcfe   :  { %v1980_v55 = vpop.permute.xlu1 %1979 }
 0xd00   :  { %v1978_v2 = vpop.permute.xlu0 %1977 }
 0xd02   :  { %v2966_v57 = vpop.eup %2965  ;;  %v1974_v0 = vpop.permute.xlu1 %1973 }
 0xd03   :  { %v1872_v59 = vmul.f32 %v2966_v57, %v2958_v44 }
 0xd04   :  { %v2968_v61 = vpop.eup %2967  ;;  %v1976_v4 = vpop.permute.xlu0 %1975 }
 0xd05   :  { %2830 = vmatprep.mubr.msk.f32.mxu0 %vm70_vm0, %v1872_v59  ;;  %v1873_v37 = vmul.f32 %v2968_v61, %v2960_v19 }
 0xd07   :  { %2831 = vmatmul.mubr.msk.f32.vlgmr.msra.gmra.mxu0 %vm70_vm0, %v1873_v37 }
 0xd08   :  { %2834 = vmatpush3.xpose.msk.msra.mxu0 %vm387_vm1, %v1984_v52  ;;  %2841 = vmatprep.mubr.msk.f32.mxu0 %vm387_vm1, %v1974_v0  ;;  %v55_v0 = vld [vmem:[%s3657_s2 + $0x78] sm:$0xff] }
 0xd09   :  { %2835 = vmatprep.subr.msk.mxu0 %vm387_vm1, %v1982_v1 }
 0xd0c   :  { %2836 = vmatpush3.xpose.msk.msra.mxu0 %vm387_vm1, %v1982_v1  ;;  %v51_v1 = vld [vmem:[%s3657_s2 + $0x58] sm:$0xff] }
 0xd0d   :  { %2837 = vmatprep.subr.msk.mxu0 %vm387_vm1, %v1980_v55 }
 0xd10   :  { %2838 = vmatpush3.xpose.msk.msra.mxu0 %vm387_vm1, %v1980_v55 }
 0xd11   :  { %2839 = vmatprep.subr.msk.mxu0 %vm387_vm1, %v1978_v2 }
 0xd14   :  { %2840 = vmatpush3.xpose.msk.msra.mxu0 %vm387_vm1, %v1978_v2  ;;  %v47_v2 = vld [vmem:[%s3657_s2 + $0x38] sm:$0xff] }
 0xd17   :  { %2842 = vmatmul.mubr.msk.f32.vlgmr.msra.gmra.mxu0 %vm387_vm1, %v1976_v4  ;;  %v43_v4 = vld [vmem:[%s3657_s2 + $0x18] sm:$0xff] }
 0xd89   :  { %v2810_v6 = vpop.f32.mrf.mxu0 }
 0xd8a   :  { %v1750_v18 = vadd.f32 %v2810_v6, %v3504_v42  ;;  %v67_v6 = vld [vmem:[%s3658_s3 + $0x38] sm:$0xff] }
 0xd8b   :  { %v1744_v12 = vpop.f32.mrf.mxu0  ;;  %2866 = vmatprep.subr.mxu0 %v67_v6 }
 0xd8c   :  { %v1745_v20 = vadd.f32 %v1744_v12, %v3506_v63  ;;  %v66_v12 = vld [vmem:[%s3658_s3 + $0x30] sm:$0xff]  ;;  %2867 = vmatpush3.msra.mxu0 %v67_v6 }
 0xd8d   :  { %2868 = vmatprep.subr.mxu0 %v66_v12 }
 0xd8e   :  { %2869 = vmatpush3.msra.mxu0 %v66_v12 }
 0xdc7   :  { %v2832_v14 = vpop.f32.mrf.mxu0 }
 0xdc8   :  { %v1972_v17 = vadd.f32 %v2832_v14, %v1750_v18  ;;  %v65_v18 = vld [vmem:[%s3658_s3 + $0x28] sm:$0xff]  ;;  %v64_v14 = vld [vmem:[%s3658_s3 + $0x20] sm:$0xff] }
 0xdc9   :  { %v1962_v22 = vpop.f32.mrf.mxu0  ;;  %2870 = vmatprep.subr.mxu0 %v65_v18 }
 0xdca   :  { %v1971_v24 = vadd.f32 %v1962_v22, %v1745_v20  ;;  %2871 = vmatpush3.msra.mxu0 %v65_v18 }
 0xdcb   :  { %2872 = vmatprep.subr.mxu0 %v64_v14 }
 0xdcc   :  { %2873 = vmatpush3.msra.mxu0 %v64_v14 }
 0xdd7   :  { %v2843_v28 = vpop.f32.mrf.mxu0 }
 0xdd8   :  { %v2069_v3 = vadd.f32 %v2843_v28, %v39_v26 }
 0xdd9   :  { %v2063_v50 = vpop.f32.mrf.mxu0 }
 0xdda   :  { %v2064_v32 = vadd.f32 %v2063_v50, %v38_v29  ;;  %v2075_v42 = vsel %vm70_vm0, %v2069_v3, -inf  ;;  %v2225_v29 = vsub.s32 2, %v3340_v56 }
 0xddb   :  { %2076 = vmax.xlane.f32.xlu0 %v2075_v42 }
 0xddc   :  { %v2072_v63 = vsel %vm70_vm0, %v2064_v32, -inf  ;;  %v2226_v50 = vrot.slane %v3346_v58, %v2225_v29 }
 0xddd   :  { %2073 = vmax.xlane.f32.xlu1 %v2072_v63 }
 0xdee   :  { %2098 = vrot.lane.b32.xlu1 %v3465_v43, %s3014_s22 }
 0xdf1   :  { %2100 = vrot.lane.b32.xlu0 %v3458_v54, %s3014_s22 }
 0xe64   :  { %v2077_v34 = vpop.xlane.xlu0 %2076 }
 0xe65   :  { %v2079_v40 = vsub.f32 %v2069_v3, %v2077_v34 }
 0xe66   :  { %v2074_v25 = vpop.xlane.xlu1 %2073 }
 0xe67   :  { %v2082_v33 = vmul.f32 1.442695, %v2079_v40  ;;  %v2078_v21 = vsub.f32 %v2064_v32, %v2074_v25  ;;  %v2231_v32 = vsub.s32 3, %v3340_v56 }
 0xe68   :  { %v2101_v36 = vpop.permute.xlu0 %2100 }
 0xe69   :  { %2969 = vpow2.f32 %v2082_v33  ;;  %v2080_v38 = vmul.f32 1.442695, %v2078_v21  ;;  %2844 = vmatprep.subr.mxu1 %v2101_v36  ;;  %v2232_v25 = vrot.slane %v3346_v58, %v2231_v32 }
 0xe6a   :  { %2845 = vmatpush3.msra.mxu1 %v2101_v36  ;;  %v2099_v39 = vpop.permute.xlu1 %2098 }
 0xe6b   :  { %2971 = vpow2.f32 %v2080_v38  ;;  %2846 = vmatprep.subr.mxu1 %v2099_v39  ;;  %v63_v38 = vld [vmem:[%s3658_s3 + $0x18] sm:$0xff] }
 0xe6c   :  { %2847 = vmatpush3.msra.mxu1 %v2099_v39  ;;  %2874 = vmatprep.subr.mxu0 %v63_v38  ;;  %v62_v39 = vld [vmem:[%s3658_s3 + $0x10] sm:$0xff] }
 0xe6d   :  { %2875 = vmatpush3.msra.mxu0 %v63_v38 }
 0xe6e   :  { %2876 = vmatprep.subr.mxu0 %v62_v39 }
 0xe6f   :  { %2877 = vmatpush3.msra.mxu0 %v62_v39 }
 0xe76   :  { %v2970_v46 = vpop.eup %2969 }
 0xe77   :  { %v2087_v43 = vsel %vm70_vm0, %v2970_v46, 0.0 }
 0xe78   :  { %v2972_v44 = vpop.eup %2971  ;;  %2088 = vadd.xlane.f32.xlu1 %v2087_v43  ;;  %v60_v43 = vld [vmem:[%s3658_s3] sm:$0xff] }
 0xe79   :  { %v2084_v54 = vsel %vm70_vm0, %v2972_v44, 0.0 }
 0xe7a   :  { %2085 = vadd.xlane.f32.xlu0 %v2084_v54 }
 0xe89   :  { %2096 = vrot.lane.b32.xlu1 %v3472_v9, %s3014_s22  ;;  %v69_v9 = vld [vmem:[%s3658_s3 + $0x48] sm:$0xff] }
 0xe8a   :  { %v2194_v13 = vrot.slane %v69_v9, %v1220_v41 }
 0xe90   :  { %2094 = vrot.lane.b32.xlu0 %v3478_v23, %s3014_s22 }
 0xf01   :  { %v2089_v19 = vpop.xlane.xlu1 %2088 }
 0xf02   :  { %2973 = vrcp.f32 %v2089_v19 }
 0xf03   :  { %v2086_v5 = vpop.xlane.xlu0 %2085 }
 0xf04   :  { %2975 = vrcp.f32 %v2086_v5 }
 0xf05   :  { %v2097_v53 = vpop.permute.xlu1 %2096 }
 0xf06   :  { %2848 = vmatprep.subr.mxu1 %v2097_v53 }
 0xf07   :  { %v2095_v10 = vpop.permute.xlu0 %2094  ;;  %2849 = vmatpush3.msra.mxu1 %v2097_v53 }
 0xf08   :  { %2850 = vmatprep.subr.mxu1 %v2095_v10 }
 0xf09   :  { %2851 = vmatpush3.msra.mxu1 %v2095_v10 }
 0xf0a   :  { %2855 = vmatprep.subr.mxu1 %v55_v0 }
 0xf0f   :  { %v2974_v45 = vpop.eup %2973 }
 0xf10   :  { %v2093_v27 = vmul.f32 %v2974_v45, %v2970_v46  ;;  %v61_v46 = vld [vmem:[%s3658_s3 + $0x8] sm:$0xff] }
 0xf11   :  { %v2976_v11 = vpop.eup %2975  ;;  %2878 = vmatprep.subr.mxu0 %v61_v46 }
 0xf12   :  { %v2092_v7 = vmul.f32 %v2976_v11, %v2972_v44  ;;  %2879 = vmatpush3.msra.mxu0 %v61_v46  ;;  %v2551_v44 = vld [vmem:[%s3657_s2 + $0x98] ss:$0 sm:$0xff]  ;;  %v2324_v11 = vsub.s32 6, %v3340_v56  ;;  %s3020_s2 = smov [#allocation2]  }
 0xf13   :  { %2880 = vmatprep.subr.mxu0 %v60_v43  ;;  %s2455_s3 = sshll.u32 %s3020_s2, 4  ;;  %s2456_s3 = int_to_ptr.vmem [resolvable:$true] %s2455_s3 }
 0xf14   :  { %2852 = vmatprep.mubr.msk.f32.mxu1 %vm70_vm0, %v2092_v7  ;;  %2881 = vmatpush3.msra.mxu0 %v60_v43  ;;  %v2325_v7 = vrot.slane %v3346_v58, %v2324_v11  ;;  %s2985_s1 = scalar_lea.vmem %s2456_s3, 256  ;;  %p2990_p1 = scmp.lt.s32.totalorder %s2456_s3, %s2456_s3 }
 0xf15   :  { %2853 = vmatmul.mubr.msk.f32.vlgmr.msra.gmra.mxu1 %vm70_vm0, %v2093_v27  ;;  %p2986_p0 = scmp.ne.s32.totalorder %s2456_s3, %s2985_s1  ;;  %p2991_p2 = scmp.lt.s32.totalorder %s2985_s1, %s2985_s1 }
 0xf16   :  { %2856 = vmatpush3.msra.mxu1 %v55_v0 }
 0xf17   :  { %2857 = vmatprep.subr.mxu1 %v51_v1  ;;  %p2992_p3 = por %p2991_p2, %p2990_p1 }
 0xf18   :  { %2858 = vmatpush3.msra.mxu1 %v51_v1  ;;  %v2438_v1 = vsub.s32 4, %v3340_v56 }
 0xf19   :  { %2859 = vmatprep.subr.mxu1 %v47_v2  ;;  %p2993_p4 = pnand %p2992_p3, %p2986_p0 }
 0xf1a   :  { %2860 = vmatpush3.msra.mxu1 %v47_v2  ;;  %v2444_v2 = vsub.s32 5, %v3340_v56 }
 0xf1b   :  { %2861 = vmatprep.subr.mxu1 %v43_v4 }
 0xf1c   :  { %2862 = vmatpush3.msra.mxu1 %v43_v4  ;;  %v2439_v4 = vrot.slane %v3346_v58, %v2438_v1  ;;  %v2445_v18 = vrot.slane %v3346_v58, %v2444_v2 }
 0xfd5   :  { %v2854_v23 = vpop.f32.mrf.mxu1 }
 0xfd6   :  { %v2188_v30 = vadd.f32 %v2854_v23, %v1972_v17 }
 0xfd7   :  { %v2178_v16 = vpop.f32.mrf.mxu1 }
 0xfd8   :  { %v2190_v60 = vadd.f32 %v2188_v30, %v3399_v51  ;;  %v2187_v62 = vadd.f32 %v2178_v16, %v1971_v24 }
 0xfda   :  { %v2189_v8 = vadd.f32 %v2187_v62, %v3397_v49  ;;  %v2196_v15 = vadd.f32 %v2194_v13, %v2190_v60 }
 0xfdc   :  { %v2200_v35 = vsel %vm70_vm0, %v2196_v15, 0.0  ;;  %v2195_v31 = vadd.f32 %v2194_v13, %v2189_v8 }
 0xfdd   :  { %2201 = vadd.xlane.f32.xlu0 %v2200_v35 }
 0xfde   :  { %v2197_v47 = vsel %vm70_vm0, %v2195_v31, 0.0 }
 0xfdf   :  { %2198 = vadd.xlane.f32.xlu1 %v2197_v47 }
0x1066   :  { %v2202_v48 = vpop.xlane.xlu0 %2201 }
0x1067   :  { %v2204_v52 = vmul.f32 0.03125, %v2202_v48 }
0x1068   :  { %v2199_v55 = vpop.xlane.xlu1 %2198 }
0x1069   :  { %v2206_v57 = vsub.f32 %v2196_v15, %v2204_v52  ;;  %v2203_v59 = vmul.f32 0.03125, %v2199_v55 }
0x106b   :  { %v2205_v41 = vsub.f32 %v2195_v31, %v2203_v59  ;;  %v2208_v61 = vmul.f32 %v2206_v57, %v2206_v57 }
0x106d   :  { %v2212_v51 = vsel %vm70_vm0, %v2208_v61, 0.0  ;;  %v2207_v37 = vmul.f32 %v2205_v41, %v2205_v41 }
0x106e   :  { %2213 = vadd.xlane.f32.xlu1 %v2212_v51 }
0x106f   :  { %v2209_v49 = vsel %vm70_vm0, %v2207_v37, 0.0 }
0x1070   :  { %2210 = vadd.xlane.f32.xlu0 %v2209_v49 }
0x10f7   :  { %v2214_v20 = vpop.xlane.xlu1 %2213 }
0x10f8   :  { %v2216_v17 = vmul.f32 0.03125, %v2214_v20 }
0x10f9   :  { %v2211_v22 = vpop.xlane.xlu0 %2210 }
0x10fa   :  { %v2218_v24 = vadd.f32 1e-05, %v2216_v17  ;;  %v2215_v26 = vmul.f32 0.03125, %v2211_v22 }
0x10fc   :  { %2977 = vrsqrt.f32 %v2218_v24  ;;  %v2217_v28 = vadd.f32 1e-05, %v2215_v26 }
0x10fe   :  { %2979 = vrsqrt.f32 %v2217_v28 }
0x1109   :  { %v2978_v3 = vpop.eup %2977 }
0x110a   :  { %v2222_v42 = vmul.f32 %v2978_v3, %v2206_v57 }
0x110b   :  { %v2980_v63 = vpop.eup %2979 }
0x110c   :  { %v2221_v34 = vmul.f32 %v2980_v63, %v2205_v41  ;;  %v2228_v40 = vmul.f32 %v2226_v50, %v2222_v42 }
0x110e   :  { %v2227_v33 = vmul.f32 %v2226_v50, %v2221_v34  ;;  %v2234_v36 = vadd.f32 %v2232_v25, %v2228_v40 }
0x1110   :  { %v2233_v21 = vadd.f32 %v2232_v25, %v2227_v33 }
0x1112   :  { %2863 = vmatprep.mubr.msk.f32.mxu1 %vm70_vm0, %v2233_v21 }
0x1113   :  { %2864 = vmatmul.mubr.msk.f32.vlgmr.msra.gmra.mxu1 %vm70_vm0, %v2234_v36 }
0x11d3   :  { %v2865_v54 = vpop.f32.mrf.mxu1 }
0x11d4   :  { %v2317_v19 = vadd.f32 %v2865_v54, %v2551_v44 }
0x11d5   :  { %v2311_v5 = vpop.f32.mrf.mxu1 }
0x11d6   :  { %v2312_v53 = vadd.f32 %v2551_v44, %v2311_v5  ;;  %v2321_v45 = vmax.f32 %v2317_v19, 0.0 }
0x11d8   :  { %v2320_v10 = vmax.f32 %v2312_v53, 0.0 }
0x11da   :  { %2882 = vmatprep.mubr.msk.f32.mxu0 %vm2326_vm3, %v2320_v10 }
0x11db   :  { %2883 = vmatmul.mubr.msk.f32.vlgmr.msra.gmra.mxu0 %vm2326_vm3, %v2321_v45 }
0x129b   :  { %v2884_v27 = vpop.f32.mrf.mxu0 }
0x129c   :  { %v2405_v9 = vadd.f32 %v2884_v27, %v2325_v7 }
0x129d   :  { %v2399_v23 = vpop.f32.mrf.mxu0 }
0x129e   :  { %v2409_v30 = vadd.f32 %v2405_v9, %v2234_v36  ;;  %v2400_v13 = vadd.f32 %v2399_v23, %v2325_v7 }
0x12a0   :  { %v2408_v16 = vadd.f32 %v2400_v13, %v2233_v21  ;;  %v2413_v60 = vsel %vm70_vm0, %v2409_v30, 0.0 }
0x12a1   :  { %2414 = vadd.xlane.f32.xlu1 %v2413_v60 }
0x12a2   :  { %v2410_v62 = vsel %vm70_vm0, %v2408_v16, 0.0 }
0x12a3   :  { %2411 = vadd.xlane.f32.xlu0 %v2410_v62 }
0x132a   :  { %v2415_v8 = vpop.xlane.xlu1 %2414 }
0x132b   :  { %v2417_v15 = vmul.f32 0.03125, %v2415_v8 }
0x132c   :  { %v2412_v35 = vpop.xlane.xlu0 %2411 }
0x132d   :  { %v2419_v31 = vsub.f32 %v2409_v30, %v2417_v15  ;;  %v2416_v47 = vmul.f32 0.03125, %v2412_v35 }
0x132f   :  { %v2418_v48 = vsub.f32 %v2408_v16, %v2416_v47  ;;  %v2421_v52 = vmul.f32 %v2419_v31, %v2419_v31 }
0x1331   :  { %v2425_v55 = vsel %vm70_vm0, %v2421_v52, 0.0  ;;  %v2420_v57 = vmul.f32 %v2418_v48, %v2418_v48 }
0x1332   :  { %2426 = vadd.xlane.f32.xlu1 %v2425_v55 }
0x1333   :  { %v2422_v59 = vsel %vm70_vm0, %v2420_v57, 0.0 }
0x1334   :  { %2423 = vadd.xlane.f32.xlu0 %v2422_v59 }
0x13bb   :  { %v2427_v41 = vpop.xlane.xlu1 %2426 }
0x13bc   :  { %v2429_v61 = vmul.f32 0.03125, %v2427_v41 }
0x13bd   :  { %v2424_v51 = vpop.xlane.xlu0 %2423 }
0x13be   :  { %v2431_v37 = vadd.f32 1e-05, %v2429_v61  ;;  %v2428_v49 = vmul.f32 0.03125, %v2424_v51 }
0x13c0   :  { %2981 = vrsqrt.f32 %v2431_v37  ;;  %v2430_v0 = vadd.f32 1e-05, %v2428_v49 }
0x13c2   :  { %2983 = vrsqrt.f32 %v2430_v0 }
0x13cd   :  { %v2982_v6 = vpop.eup %2981 }
0x13ce   :  { %v2435_v12 = vmul.f32 %v2982_v6, %v2419_v31 }
0x13cf   :  { %v2984_v14 = vpop.eup %2983 }
0x13d0   :  { %v2434_v20 = vmul.f32 %v2984_v14, %v2418_v48  ;;  %v2441_v17 = vmul.f32 %v2439_v4, %v2435_v12 }
0x13d2   :  { %v2440_v22 = vmul.f32 %v2439_v4, %v2434_v20  ;;  %v2447_v24 = vadd.f32 %v2445_v18, %v2441_v17 }
0x13d4   :  { %v2446_v26 = vadd.f32 %v2445_v18, %v2440_v22  ;;  %2449 = vst.msk [vmem:[#allocation2 + $0x8] sm:$0xff] %vm70_vm0, %v2447_v24 }
0x13d6   :  { %2448 = vst.msk [vmem:[#allocation2] sm:$0xff] %vm70_vm0, %v2446_v26 }
0x13d7   :  { %2996 = shalt.err (!%p2993_p4)
}
0x13d8   :  { %s3021_s22 = smov 128   ;;  %s3022_s24 = smov 8  }
0x13d9   :  { %2461 = dma.vmem_to_hbm [thread:$0]  %s2456_s3, 256, %s3659_s4, [#allocation3], %s3021_s22, %s3021_s22, %s3022_s24  }
0x13da   :  { %3005 = dma.done.wait [#allocation3], 256  }
0x13db   :  { %3006 = vsyncadd [#allocation3], 4294967040 }
0x13dc   :  { %2465 = vsyncpa [#allocation3], 1 }

</bundles_post_ra>
